<compile_context>
chip_gen: v5e
topology: v5e:2x2
jax: 0.10.0
libtpu: 0.0.40
codegen_flags: <defaults>
</compile_context>

<pallas_src>
import functools

import jax
import jax.numpy as jnp
from jax.experimental import pallas as pl
from jax.experimental.pallas import tpu as pltpu


# ---------------------------------------------------------------------------
# Kernels
# ---------------------------------------------------------------------------
def gcn_layer1_kernel(adj_ref, y_ref, ydiag_ref, dis_ref, b_ref, w2_ref,
                      out_ref, acc_ref, *, tk, y_resident):
    """Fused GCN layer 1 + layer-2 projection.

    Computes, for the current row tile i:
        agg   = dis_i * ( sum_k A[i,k] @ y_s[k]  +  y_s[i] )          (A_hat @ y1)
        h     = relu(agg + b1)
        out   = bf16( dis_i * (h @ W2bd) )            # dis-scaled layer-2 features
    where y_s = dis ⊙ (X @ W1) was column-scaled outside the kernel.

    adj_ref  : (TM, TK) bf16 raw (padded) adjacency tile — streamed, no VPU work
    y_ref    : (N_pad, P1) or (TK, P1) bf16 dis-scaled projected features
    ydiag_ref: (TM, P1) bf16 same features, row tile (self-loop term)
    dis_ref  : (TM, 1)  f32 row normalization
    b_ref    : (1, P1)  f32 layer-1 bias
    w2_ref   : (P1, P2) f32 block-diagonal packed (mu|logvar) x heads weights
    out_ref  : (TM, P2) bf16 (resident across K)
    acc_ref  : (TM, P1) f32 accumulator scratch
    """
    k = pl.program_id(1)

    @pl.when(k == 0)
    def _():
        acc_ref[...] = jnp.zeros_like(acc_ref)

    if y_resident:
        off = pl.multiple_of(k * tk, tk)
        y_blk = y_ref[pl.ds(off, tk), :]
    else:
        y_blk = y_ref[...]
    acc_ref[...] += jnp.dot(adj_ref[...], y_blk,
                            preferred_element_type=jnp.float32)

    @pl.when(k == pl.num_programs(1) - 1)
    def _():
        agg = dis_ref[...] * (acc_ref[...] + ydiag_ref[...].astype(jnp.float32))
        h = jnp.maximum(agg + b_ref[...], 0.0)
        y2 = jnp.dot(h, w2_ref[...], preferred_element_type=jnp.float32)
        out_ref[...] = (dis_ref[...] * y2).astype(out_ref.dtype)


def gcn_layer2_kernel(adj_ref, y_ref, ydiag_ref, dis_ref, b_ref, out_ref,
                      *, tk, y_resident):
    """GCN layer 2 (mu|logvar for all heads), accumulating directly into out_ref.

        out = dis_i * ( sum_k A[i,k] @ y2_s[k] + y2_s[i] ) + b2   (= A_hat @ y2 + b2)
    """
    k = pl.program_id(1)

    @pl.when(k == 0)
    def _():
        out_ref[...] = jnp.zeros_like(out_ref)

    if y_resident:
        off = pl.multiple_of(k * tk, tk)
        y_blk = y_ref[pl.ds(off, tk), :]
    else:
        y_blk = y_ref[...]
    out_ref[...] += jnp.dot(adj_ref[...], y_blk,
                            preferred_element_type=jnp.float32)

    @pl.when(k == pl.num_programs(1) - 1)
    def _():
        out_ref[...] = (dis_ref[...] *
                        (out_ref[...] + ydiag_ref[...].astype(jnp.float32))
                        + b_ref[...])


def inner_product_decoder_kernel(zi_ref, zj_ref, out_ref):
    """out[i_tile, j_tile] = sigmoid(Z[i_tile] @ Z[j_tile].T)  (NT dot, no z^T)."""
    logits = jax.lax.dot_general(
        zi_ref[...], zj_ref[...],
        dimension_numbers=(((1,), (1,)), ((), ())),
        preferred_element_type=jnp.float32)
    out_ref[...] = jax.nn.sigmoid(logits)


# ---------------------------------------------------------------------------
# Pallas wrappers
# ---------------------------------------------------------------------------
def _round_up(v, m):
    return ((v + m - 1) // m) * m


def _pick_tiles(n):
    """n_pad padded to 128 (the actual tiling requirement), tm capped so the
    parallel row axis has >=2 tiles when possible (v7x megacore), tk <= 1024.
    Worst-case adjacency tile 512x1024 bf16 = 1 MiB (x2 buffers)."""
    n_pad = _round_up(max(n, 1), 128)

    def largest_tile(cap):
        for t in (1024, 512, 256, 128):
            if t <= cap and n_pad % t == 0:
                return t
        return 128

    tm_cap = 512 if n_pad < 256 else min(512, n_pad // 2)
    tm = largest_tile(max(tm_cap, 128))
    tk = largest_tile(min(1024, n_pad))
    return n_pad, tm, tk


_VMEM_LIMIT = 32 * 1024 * 1024  # explicit: above v5e's 16 MiB default, <= v7x physical


def _gcn_layer(adj_bf, y_s, dis_n1, bias_2d, w2bd, *, tm, tk):
    """One adjacency pass. If w2bd is not None, this is layer 1 (fused relu +
    layer-2 projection, bf16 output); otherwise layer 2 (f32 output)."""
    n_pad = adj_bf.shape[0]
    p_in = y_s.shape[1]
    # Keep projected features fully VMEM-resident across K when they fit
    # (double-buffered budget <= 8 MiB); otherwise stream (tk, p) slices.
    y_resident = 2 * n_pad * p_in * jnp.dtype(y_s.dtype).itemsize <= (8 << 20)
    if y_resident:
        y_spec = pl.BlockSpec((n_pad, p_in), lambda i, k: (0, 0))
    else:
        y_spec = pl.BlockSpec((tk, p_in), lambda i, k: (k, 0))

    in_specs = [
        pl.BlockSpec((tm, tk), lambda i, k: (i, k)),        # raw bf16 adjacency tile
        y_spec,                                             # dis-scaled features
        pl.BlockSpec((tm, p_in), lambda i, k: (i, 0)),      # same features, row tile
        pl.BlockSpec((tm, 1), lambda i, k: (i, 0)),         # dis (row scale)
        pl.BlockSpec((1, bias_2d.shape[1]), lambda i, k: (0, 0)),
    ]
    cparams = pltpu.CompilerParams(
        dimension_semantics=("parallel", "arbitrary"),
        vmem_limit_bytes=_VMEM_LIMIT)
    grid = (n_pad // tm, n_pad // tk)  # reduction axis (k) last

    if w2bd is not None:
        p_out = w2bd.shape[1]
        kernel = functools.partial(gcn_layer1_kernel, tk=tk, y_resident=y_resident)
        return pl.pallas_call(
            kernel,
            out_shape=jax.ShapeDtypeStruct((n_pad, p_out), jnp.bfloat16),
            grid_spec=pltpu.PrefetchScalarGridSpec(
                num_scalar_prefetch=0, grid=grid,
                in_specs=in_specs + [pl.BlockSpec((p_in, p_out), lambda i, k: (0, 0))],
                out_specs=pl.BlockSpec((tm, p_out), lambda i, k: (i, 0)),
                scratch_shapes=[pltpu.VMEM((tm, p_in), jnp.float32)]),
            compiler_params=cparams,
        )(adj_bf, y_s, y_s, dis_n1, bias_2d, w2bd)

    p_out = bias_2d.shape[1]
    kernel = functools.partial(gcn_layer2_kernel, tk=tk, y_resident=y_resident)
    return pl.pallas_call(
        kernel,
        out_shape=jax.ShapeDtypeStruct((n_pad, p_out), jnp.float32),
        grid_spec=pltpu.PrefetchScalarGridSpec(
            num_scalar_prefetch=0, grid=grid,
            in_specs=in_specs,
            out_specs=pl.BlockSpec((tm, p_out), lambda i, k: (i, 0))),
        compiler_params=cparams,
    )(adj_bf, y_s, y_s, dis_n1, bias_2d)


def _inner_product_decode(z, n_pad, *, tile):
    n, h2 = z.shape
    z_pad = jnp.zeros((n_pad, h2), jnp.float32).at[:n].set(z)
    return pl.pallas_call(
        inner_product_decoder_kernel,
        out_shape=jax.ShapeDtypeStruct((n_pad, n_pad), jnp.float32),
        grid_spec=pltpu.PrefetchScalarGridSpec(
            num_scalar_prefetch=0,
            grid=(n_pad // tile, n_pad // tile),
            in_specs=[
                pl.BlockSpec((tile, h2), lambda i, j: (i, 0)),
                pl.BlockSpec((tile, h2), lambda i, j: (j, 0)),
            ],
            out_specs=pl.BlockSpec((tile, tile), lambda i, j: (i, j)),
        ),
        compiler_params=pltpu.CompilerParams(
            dimension_semantics=("parallel", "parallel"),
            vmem_limit_bytes=_VMEM_LIMIT),
    )(z_pad, z_pad)


# ---------------------------------------------------------------------------
# Model forward
# ---------------------------------------------------------------------------
def multi_head_gcn_gvae_forward(params, x, adj, *, training=False, key=None):
    """x: [N, F_in] f32, adj: dense [N, N] f32 (unnormalized, no self loops).

    Returns (adj_recon [N,N], mu_max [N,H2], logvar_max [N,H2])."""
    heads = params["heads"]
    num_heads = len(heads)
    n, f_in = x.shape
    h1 = heads[0]["w1"].shape[1]
    h2 = heads[0]["wmu"].shape[1]

    n_pad, tm, tk = _pick_tiles(n)
    p1 = _round_up(num_heads * h1, 128)       # lane-dense hidden width
    p2 = _round_up(num_heads * 2 * h2, 128)   # fused (mu|logvar) x heads width

    # --- GCN normalization scalars only; the N^2 adjacency is padded + cast to
    #     bf16 in ONE fused XLA pass and streamed raw by the kernels -------------
    deg = adj.sum(axis=1) + 1.0               # + self loop
    dis = jax.lax.rsqrt(deg)
    dis_pad = jnp.ones((n_pad,), jnp.float32).at[:n].set(dis)
    dis_n1 = dis_pad[:, None]                 # (n_pad, 1) row scale for kernels
    adj_bf = jnp.zeros((n_pad, n_pad), jnp.bfloat16).at[:n, :n].set(
        adj.astype(jnp.bfloat16))

    # --- pack per-head weights: all heads + (mu|logvar) fused, zero padded ------
    w1_cat = jnp.concatenate([hp["w1"] for hp in heads], axis=1)   # [f_in, H*h1]
    b1_cat = jnp.concatenate([hp["b1"] for hp in heads])           # [H*h1]
    w1p = jnp.zeros((f_in, p1), jnp.float32).at[:, : num_heads * h1].set(w1_cat)
    b1p = jnp.zeros((1, p1), jnp.float32).at[0, : num_heads * h1].set(b1_cat)

    w2bd = jnp.zeros((p1, p2), jnp.float32)                        # block-diagonal
    b2p = jnp.zeros((1, p2), jnp.float32)
    for i, hp in enumerate(heads):
        w2_head = jnp.concatenate([hp["wmu"], hp["wlv"]], axis=1)  # [h1, 2*h2]
        b2_head = jnp.concatenate([hp["bmu"], hp["blv"]])          # [2*h2]
        w2bd = w2bd.at[i * h1:(i + 1) * h1,
                       i * 2 * h2:(i + 1) * 2 * h2].set(w2_head)
        b2p = b2p.at[0, i * 2 * h2:(i + 1) * 2 * h2].set(b2_head)

    # --- layer 1 (+ fused layer-2 projection): emits y2_s = dis ⊙ (relu(.) @ W2) --
    x_pad = jnp.zeros((n_pad, f_in), jnp.float32).at[:n].set(x)
    y1_s = (dis_pad[:, None] * (x_pad @ w1p)).astype(jnp.bfloat16)  # column scale folded in
    y2_s = _gcn_layer(adj_bf, y1_s, dis_n1, b1p, w2bd, tm=tm, tk=tk)

    # --- layer 2: all heads' mu|logvar in one adjacency pass ---------------------
    out2 = _gcn_layer(adj_bf, y2_s, dis_n1, b2p, None, tm=tm, tk=tk)

    out2 = out2[:n, : num_heads * 2 * h2].reshape(n, num_heads, 2 * h2)
    mu_all = out2[:, :, :h2]
    lv_all = out2[:, :, h2:]

    if training:
        # Mirrors the module's reparametrize (it applies exp() directly to the
        # logvar head, i.e. treats it as logstd).
        eps = jax.random.normal(key, lv_all.shape, dtype=lv_all.dtype)
        z_all = mu_all + eps * jnp.exp(lv_all)
    else:
        z_all = mu_all

    mu_max = jnp.max(mu_all, axis=1)
    logvar_max = jnp.max(lv_all, axis=1)
    z_max = jnp.max(z_all, axis=1)

    adj_recon = _inner_product_decode(z_max, n_pad, tile=tm)[:n, :n]
    return adj_recon, mu_max, logvar_max


# ---------------------------------------------------------------------------
# Init + pure-f32 JAX reference (true module semantics, no bf16 quantization)
# ---------------------------------------------------------------------------
def glorot(key, shape):
    fan_in, fan_out = shape
    limit = jnp.sqrt(6.0 / (fan_in + fan_out))
    return jax.random.uniform(key, shape, jnp.float32, -limit, limit)


def init_multi_head_params(key, f_in, h1, h2, num_heads=3):
    heads = []
    keys = jax.random.split(key, num_heads * 3)
    for i in range(num_heads):
        k1, k2, k3 = keys[3 * i:3 * i + 3]
        heads.append(dict(
            w1=glorot(k1, (f_in, h1)), b1=jnp.zeros((h1,), jnp.float32),
            wmu=glorot(k2, (h1, h2)), bmu=jnp.zeros((h2,), jnp.float32),
            wlv=glorot(k3, (h1, h2)), blv=jnp.zeros((h2,), jnp.float32)))
    return {"heads": heads}


def reference_forward(params, x, adj):
    n = x.shape[0]
    a_hat = adj + jnp.eye(n, dtype=adj.dtype)
    deg = a_hat.sum(axis=1)
    dis = jax.lax.rsqrt(deg)
    a_norm = a_hat * dis[:, None] * dis[None, :]
    mu_list, lv_list = [], []
    for hp in params["heads"]:
        h = jnp.maximum(a_norm @ (x @ hp["w1"]) + hp["b1"], 0.0)
        mu_list.append(a_norm @ (h @ hp["wmu"]) + hp["bmu"])
        lv_list.append(a_norm @ (h @ hp["wlv"]) + hp["blv"])
    mu_max = jnp.stack(mu_list).max(axis=0)
    lv_max = jnp.stack(lv_list).max(axis=0)
    z_max = mu_max  # eval mode
    rec = jax.nn.sigmoid(z_max @ z_max.T)
    return rec, mu_max, lv_max


# ---------------------------------------------------------------------------
if __name__ == "__main__":
    # Small deterministic problem: N=48 nodes, F_in=16, H1=32, H2=16, 3 heads.
    N, F_IN, H1, H2, HEADS = 48, 16, 32, 16, 3
    key = jax.random.PRNGKey(0)
    k_x, k_a, k_p = jax.random.split(key, 3)

    x = jax.random.normal(k_x, (N, F_IN), dtype=jnp.float32)
    # random symmetric 0/1 adjacency, no self loops (GCNConv adds them itself)
    a_rand = jax.random.uniform(k_a, (N, N)) < 0.2
    adj = jnp.triu(a_rand.astype(jnp.float32), k=1)
    adj = adj + adj.T

    params = init_multi_head_params(k_p, F_IN, H1, H2, HEADS)

    # TODO(synk): training-mode reparametrization (torch.randn_like) is available via
    # training=True + an explicit PRNG key; the deterministic demo runs eval mode (z=mu).
    fwd = jax.jit(multi_head_gcn_gvae_forward)
    adj_recon, mu_max, logvar_max = fwd(params, x, adj)
    jax.block_until_ready((adj_recon, mu_max, logvar_max))

    # Decoder kernel consistency (f32 end-to-end, tight tolerance).
    rec_from_mu = jax.nn.sigmoid(mu_max @ mu_max.T)
    assert jnp.allclose(adj_recon, rec_from_mu, atol=1e-4, rtol=1e-4)

    # Encoder vs pure-f32 reference (kernels stream adjacency/features in bf16).
    rec_ref, mu_ref, lv_ref = reference_forward(params, x, adj)
    assert jnp.allclose(mu_max, mu_ref, atol=3e-2, rtol=3e-2)
    assert jnp.allclose(logvar_max, lv_ref, atol=3e-2, rtol=3e-2)
    assert jnp.allclose(adj_recon, rec_ref, atol=1e-1, rtol=1e-1)

    print("KERNEL_OK")
</pallas_src>

<mosaic_0001>
module attributes {stable_mosaic.version = 11 : i64} {
  func.func @gcn_layer1_kernel(%arg0: i32, %arg1: i32, %arg2: memref<128x128xbf16, #tpu.memory_space<vmem>>, %arg3: memref<128x128xbf16, #tpu.memory_space<vmem>>, %arg4: memref<128x128xbf16, #tpu.memory_space<vmem>>, %arg5: memref<128x1xf32, #tpu.memory_space<vmem>>, %arg6: memref<1x128xf32, #tpu.memory_space<vmem>>, %arg7: memref<128x128xf32, #tpu.memory_space<vmem>>, %arg8: memref<128x128xbf16, #tpu.memory_space<vmem>>, %arg9: memref<128x128xf32, #tpu.memory_space<vmem>>) attributes {dimension_semantics = [#tpu.dimension_semantics<parallel>, #tpu.dimension_semantics<arbitrary>], iteration_bounds = array<i64: 1, 1>, scalar_prefetch = 0 : i64, scratch_operands = 1 : i64, tpu.core_type = #tpu.core_type<tc>, window_params = [{transform_indices = @transform_0, window_bounds = array<i64: 128, 128>}, {pipeline_mode = #tpu.pipeline_mode<synchronous>, transform_indices = @transform_1, window_bounds = array<i64: 128, 128>}, {transform_indices = @transform_2, window_bounds = array<i64: 128, 128>}, {transform_indices = @transform_3, window_bounds = array<i64: 128, 1>}, {pipeline_mode = #tpu.pipeline_mode<synchronous>, transform_indices = @transform_4, window_bounds = array<i64: 1, 128>}, {pipeline_mode = #tpu.pipeline_mode<synchronous>, transform_indices = @transform_5, window_bounds = array<i64: 128, 128>}, {transform_indices = @transform_6, window_bounds = array<i64: 128, 128>}]} {
    %c0_i32 = arith.constant 0 : i32
    %0 = arith.cmpi eq, %arg1, %c0_i32 : i32
    %1 = arith.extui %0 : i1 to i32
    %c0_i32_0 = arith.constant 0 : i32
    %2 = arith.cmpi ne, %1, %c0_i32_0 : i32
    scf.if %2 {
      %cst_9 = arith.constant 0.000000e+00 : f32
      %15 = vector.broadcast %cst_9 : f32 to vector<128x128xf32>
      %c0_10 = arith.constant 0 : index
      %c0_11 = arith.constant 0 : index
      %16 = vector.load %arg9[%c0_10, %c0_11] : memref<128x128xf32, #tpu.memory_space<vmem>>, vector<128x128xf32>
      tpu.vector_store %arg9[%c0_10, %c0_11], %15 {strides = array<i32>} : memref<128x128xf32, #tpu.memory_space<vmem>>, vector<128x128xf32>,
    } else {
    }
    %c128_i32 = arith.constant 128 : i32
    %3 = arith.muli %arg1, %c128_i32 : i32
    %4 = tpu.assume_multiple %3, 128 : i32
    %5 = arith.index_cast %4 : i32 to index
    %c0 = arith.constant 0 : index
    %6 = vector.load %arg3[%5, %c0] : memref<128x128xbf16, #tpu.memory_space<vmem>>, vector<128x128xbf16>
    %c0_1 = arith.constant 0 : index
    %c0_2 = arith.constant 0 : index
    %7 = vector.load %arg9[%c0_1, %c0_2] : memref<128x128xf32, #tpu.memory_space<vmem>>, vector<128x128xf32>
    %c0_3 = arith.constant 0 : index
    %c0_4 = arith.constant 0 : index
    %8 = vector.load %arg2[%c0_3, %c0_4] : memref<128x128xbf16, #tpu.memory_space<vmem>>, vector<128x128xbf16>
    %cst = arith.constant dense<0.000000e+00> : vector<128x128xf32>
    %9 = tpu.matmul %8, %6, %cst {dimension_numbers = #tpu.dot_dimension_numbers<[1], [0], [0], [1], [0, 0, 1, 1], [], []>} : vector<128x128xbf16>, vector<128x128xbf16>, vector<128x128xf32> -> vector<128x128xf32>
    %10 = arith.addf %7, %9 : vector<128x128xf32>
    %c0_5 = arith.constant 0 : index
    %c0_6 = arith.constant 0 : index
    %11 = vector.load %arg9[%c0_5, %c0_6] : memref<128x128xf32, #tpu.memory_space<vmem>>, vector<128x128xf32>
    tpu.vector_store %arg9[%c0_5, %c0_6], %10 {strides = array<i32>} : memref<128x128xf32, #tpu.memory_space<vmem>>, vector<128x128xf32>,
    %c0_i32_7 = arith.constant 0 : i32
    %12 = arith.cmpi eq, %arg1, %c0_i32_7 : i32
    %13 = arith.extui %12 : i1 to i32
    %c0_i32_8 = arith.constant 0 : i32
    %14 = arith.cmpi ne, %13, %c0_i32_8 : i32
    scf.if %14 {
      %c0_9 = arith.constant 0 : index
      %c0_10 = arith.constant 0 : index
      %15 = vector.load %arg5[%c0_9, %c0_10] : memref<128x1xf32, #tpu.memory_space<vmem>>, vector<128x1xf32>
      %c0_11 = arith.constant 0 : index
      %c0_12 = arith.constant 0 : index
      %16 = vector.load %arg9[%c0_11, %c0_12] : memref<128x128xf32, #tpu.memory_space<vmem>>, vector<128x128xf32>
      %c0_13 = arith.constant 0 : index
      %c0_14 = arith.constant 0 : index
      %17 = vector.load %arg4[%c0_13, %c0_14] : memref<128x128xbf16, #tpu.memory_space<vmem>>, vector<128x128xbf16>
      %18 = arith.extf %17 : vector<128x128xbf16> to vector<128x128xf32>
      %19 = arith.addf %16, %18 : vector<128x128xf32>
      %20 = vector.broadcast %15 : vector<128x1xf32> to vector<128x128xf32>
      %21 = arith.mulf %20, %19 : vector<128x128xf32>
      %c0_15 = arith.constant 0 : index
      %c0_16 = arith.constant 0 : index
      %22 = vector.load %arg6[%c0_15, %c0_16] : memref<1x128xf32, #tpu.memory_space<vmem>>, vector<1x128xf32>
      %23 = vector.broadcast %22 : vector<1x128xf32> to vector<128x128xf32>
      %24 = arith.addf %21, %23 : vector<128x128xf32>
      %cst_17 = arith.constant 0.000000e+00 : f32
      %25 = vector.broadcast %cst_17 : f32 to vector<128x128xf32>
      %26 = arith.maximumf %24, %25 : vector<128x128xf32>
      %c0_18 = arith.constant 0 : index
      %c0_19 = arith.constant 0 : index
      %27 = vector.load %arg7[%c0_18, %c0_19] : memref<128x128xf32, #tpu.memory_space<vmem>>, vector<128x128xf32>
      %cst_20 = arith.constant dense<0.000000e+00> : vector<128x128xf32>
      %28 = tpu.matmul %26, %27, %cst_20 {dimension_numbers = #tpu.dot_dimension_numbers<[1], [0], [0], [1], [0, 0, 1, 1], [], []>} : vector<128x128xf32>, vector<128x128xf32>, vector<128x128xf32> -> vector<128x128xf32>
      %c0_21 = arith.constant 0 : index
      %c0_22 = arith.constant 0 : index
      %29 = vector.load %arg5[%c0_21, %c0_22] : memref<128x1xf32, #tpu.memory_space<vmem>>, vector<128x1xf32>
      %30 = vector.broadcast %29 : vector<128x1xf32> to vector<128x128xf32>
      %31 = arith.mulf %30, %28 : vector<128x128xf32>
      %32 = arith.truncf %31 : vector<128x128xf32> to vector<128x128xbf16>
      %c0_23 = arith.constant 0 : index
      %c0_24 = arith.constant 0 : index
      %33 = vector.load %arg8[%c0_23, %c0_24] : memref<128x128xbf16, #tpu.memory_space<vmem>>, vector<128x128xbf16>
      tpu.vector_store %arg8[%c0_23, %c0_24], %32 {strides = array<i32>} : memref<128x128xbf16, #tpu.memory_space<vmem>>, vector<128x128xbf16>,
    } else {
    }
    return
  }
  func.func @transform_0(%arg0: i32, %arg1: i32) -> (i32, i32) {
    %c0_i32 = arith.constant 0 : i32
    return %arg0, %arg1 : i32, i32
  }
  func.func @transform_1(%arg0: i32, %arg1: i32) -> (i32, i32) {
    %c0_i32 = arith.constant 0 : i32
    %c0_i32_0 = arith.constant 0 : i32
    %c0_i32_1 = arith.constant 0 : i32
    return %c0_i32, %c0_i32_0 : i32, i32
  }
  func.func @transform_2(%arg0: i32, %arg1: i32) -> (i32, i32) {
    %c0_i32 = arith.constant 0 : i32
    %c0_i32_0 = arith.constant 0 : i32
    return %arg0, %c0_i32 : i32, i32
  }
  func.func @transform_3(%arg0: i32, %arg1: i32) -> (i32, i32) {
    %c0_i32 = arith.constant 0 : i32
    %c0_i32_0 = arith.constant 0 : i32
    return %arg0, %c0_i32 : i32, i32
  }
  func.func @transform_4(%arg0: i32, %arg1: i32) -> (i32, i32) {
    %c0_i32 = arith.constant 0 : i32
    %c0_i32_0 = arith.constant 0 : i32
    %c0_i32_1 = arith.constant 0 : i32
    return %c0_i32, %c0_i32_0 : i32, i32
  }
  func.func @transform_5(%arg0: i32, %arg1: i32) -> (i32, i32) {
    %c0_i32 = arith.constant 0 : i32
    %c0_i32_0 = arith.constant 0 : i32
    %c0_i32_1 = arith.constant 0 : i32
    return %c0_i32, %c0_i32_0 : i32, i32
  }
  func.func @transform_6(%arg0: i32, %arg1: i32) -> (i32, i32) {
    %c0_i32 = arith.constant 0 : i32
    %c0_i32_0 = arith.constant 0 : i32
    return %arg0, %c0_i32 : i32, i32
  }
}

module attributes {stable_mosaic.version = 11 : i64} {
  func.func @gcn_layer2_kernel(%arg0: i32, %arg1: i32, %arg2: memref<128x128xbf16, #tpu.memory_space<vmem>>, %arg3: memref<128x128xbf16, #tpu.memory_space<vmem>>, %arg4: memref<128x128xbf16, #tpu.memory_space<vmem>>, %arg5: memref<128x1xf32, #tpu.memory_space<vmem>>, %arg6: memref<1x128xf32, #tpu.memory_space<vmem>>, %arg7: memref<128x128xf32, #tpu.memory_space<vmem>>) attributes {dimension_semantics = [#tpu.dimension_semantics<parallel>, #tpu.dimension_semantics<arbitrary>], iteration_bounds = array<i64: 1, 1>, scalar_prefetch = 0 : i64, scratch_operands = 0 : i64, tpu.core_type = #tpu.core_type<tc>, window_params = [{transform_indices = @transform_0, window_bounds = array<i64: 128, 128>}, {pipeline_mode = #tpu.pipeline_mode<synchronous>, transform_indices = @transform_1, window_bounds = array<i64: 128, 128>}, {transform_indices = @transform_2, window_bounds = array<i64: 128, 128>}, {transform_indices = @transform_3, window_bounds = array<i64: 128, 1>}, {pipeline_mode = #tpu.pipeline_mode<synchronous>, transform_indices = @transform_4, window_bounds = array<i64: 1, 128>}, {transform_indices = @transform_5, window_bounds = array<i64: 128, 128>}]} {
    %c0_i32 = arith.constant 0 : i32
    %0 = arith.cmpi eq, %arg1, %c0_i32 : i32
    %1 = arith.extui %0 : i1 to i32
    %c0_i32_0 = arith.constant 0 : i32
    %2 = arith.cmpi ne, %1, %c0_i32_0 : i32
    scf.if %2 {
      %cst_9 = arith.constant 0.000000e+00 : f32
      %15 = vector.broadcast %cst_9 : f32 to vector<128x128xf32>
      %c0_10 = arith.constant 0 : index
      %c0_11 = arith.constant 0 : index
      %16 = vector.load %arg7[%c0_10, %c0_11] : memref<128x128xf32, #tpu.memory_space<vmem>>, vector<128x128xf32>
      tpu.vector_store %arg7[%c0_10, %c0_11], %15 {strides = array<i32>} : memref<128x128xf32, #tpu.memory_space<vmem>>, vector<128x128xf32>,
    } else {
    }
    %c128_i32 = arith.constant 128 : i32
    %3 = arith.muli %arg1, %c128_i32 : i32
    %4 = tpu.assume_multiple %3, 128 : i32
    %5 = arith.index_cast %4 : i32 to index
    %c0 = arith.constant 0 : index
    %6 = vector.load %arg3[%5, %c0] : memref<128x128xbf16, #tpu.memory_space<vmem>>, vector<128x128xbf16>
    %c0_1 = arith.constant 0 : index
    %c0_2 = arith.constant 0 : index
    %7 = vector.load %arg7[%c0_1, %c0_2] : memref<128x128xf32, #tpu.memory_space<vmem>>, vector<128x128xf32>
    %c0_3 = arith.constant 0 : index
    %c0_4 = arith.constant 0 : index
    %8 = vector.load %arg2[%c0_3, %c0_4] : memref<128x128xbf16, #tpu.memory_space<vmem>>, vector<128x128xbf16>
    %cst = arith.constant dense<0.000000e+00> : vector<128x128xf32>
    %9 = tpu.matmul %8, %6, %cst {dimension_numbers = #tpu.dot_dimension_numbers<[1], [0], [0], [1], [0, 0, 1, 1], [], []>} : vector<128x128xbf16>, vector<128x128xbf16>, vector<128x128xf32> -> vector<128x128xf32>
    %10 = arith.addf %7, %9 : vector<128x128xf32>
    %c0_5 = arith.constant 0 : index
    %c0_6 = arith.constant 0 : index
    %11 = vector.load %arg7[%c0_5, %c0_6] : memref<128x128xf32, #tpu.memory_space<vmem>>, vector<128x128xf32>
    tpu.vector_store %arg7[%c0_5, %c0_6], %10 {strides = array<i32>} : memref<128x128xf32, #tpu.memory_space<vmem>>, vector<128x128xf32>,
    %c0_i32_7 = arith.constant 0 : i32
    %12 = arith.cmpi eq, %arg1, %c0_i32_7 : i32
    %13 = arith.extui %12 : i1 to i32
    %c0_i32_8 = arith.constant 0 : i32
    %14 = arith.cmpi ne, %13, %c0_i32_8 : i32
    scf.if %14 {
      %c0_9 = arith.constant 0 : index
      %c0_10 = arith.constant 0 : index
      %15 = vector.load %arg5[%c0_9, %c0_10] : memref<128x1xf32, #tpu.memory_space<vmem>>, vector<128x1xf32>
      %c0_11 = arith.constant 0 : index
      %c0_12 = arith.constant 0 : index
      %16 = vector.load %arg7[%c0_11, %c0_12] : memref<128x128xf32, #tpu.memory_space<vmem>>, vector<128x128xf32>
      %c0_13 = arith.constant 0 : index
      %c0_14 = arith.constant 0 : index
      %17 = vector.load %arg4[%c0_13, %c0_14] : memref<128x128xbf16, #tpu.memory_space<vmem>>, vector<128x128xbf16>
      %18 = arith.extf %17 : vector<128x128xbf16> to vector<128x128xf32>
      %19 = arith.addf %16, %18 : vector<128x128xf32>
      %20 = vector.broadcast %15 : vector<128x1xf32> to vector<128x128xf32>
      %21 = arith.mulf %20, %19 : vector<128x128xf32>
      %c0_15 = arith.constant 0 : index
      %c0_16 = arith.constant 0 : index
      %22 = vector.load %arg6[%c0_15, %c0_16] : memref<1x128xf32, #tpu.memory_space<vmem>>, vector<1x128xf32>
      %23 = vector.broadcast %22 : vector<1x128xf32> to vector<128x128xf32>
      %24 = arith.addf %21, %23 : vector<128x128xf32>
      %c0_17 = arith.constant 0 : index
      %c0_18 = arith.constant 0 : index
      %25 = vector.load %arg7[%c0_17, %c0_18] : memref<128x128xf32, #tpu.memory_space<vmem>>, vector<128x128xf32>
      tpu.vector_store %arg7[%c0_17, %c0_18], %24 {strides = array<i32>} : memref<128x128xf32, #tpu.memory_space<vmem>>, vector<128x128xf32>,
    } else {
    }
    return
  }
  func.func @transform_0(%arg0: i32, %arg1: i32) -> (i32, i32) {
    %c0_i32 = arith.constant 0 : i32
    return %arg0, %arg1 : i32, i32
  }
  func.func @transform_1(%arg0: i32, %arg1: i32) -> (i32, i32) {
    %c0_i32 = arith.constant 0 : i32
    %c0_i32_0 = arith.constant 0 : i32
    %c0_i32_1 = arith.constant 0 : i32
    return %c0_i32, %c0_i32_0 : i32, i32
  }
  func.func @transform_2(%arg0: i32, %arg1: i32) -> (i32, i32) {
    %c0_i32 = arith.constant 0 : i32
    %c0_i32_0 = arith.constant 0 : i32
    return %arg0, %c0_i32 : i32, i32
  }
  func.func @transform_3(%arg0: i32, %arg1: i32) -> (i32, i32) {
    %c0_i32 = arith.constant 0 : i32
    %c0_i32_0 = arith.constant 0 : i32
    return %arg0, %c0_i32 : i32, i32
  }
  func.func @transform_4(%arg0: i32, %arg1: i32) -> (i32, i32) {
    %c0_i32 = arith.constant 0 : i32
    %c0_i32_0 = arith.constant 0 : i32
    %c0_i32_1 = arith.constant 0 : i32
    return %c0_i32, %c0_i32_0 : i32, i32
  }
  func.func @transform_5(%arg0: i32, %arg1: i32) -> (i32, i32) {
    %c0_i32 = arith.constant 0 : i32
    %c0_i32_0 = arith.constant 0 : i32
    return %arg0, %c0_i32 : i32, i32
  }
}

module attributes {stable_mosaic.version = 11 : i64} {
  func.func @inner_product_decoder_kernel(%arg0: i32, %arg1: i32, %arg2: memref<128x16xf32, #tpu.memory_space<vmem>>, %arg3: memref<128x16xf32, #tpu.memory_space<vmem>>, %arg4: memref<128x128xf32, #tpu.memory_space<vmem>>) attributes {dimension_semantics = [#tpu.dimension_semantics<parallel>, #tpu.dimension_semantics<parallel>], iteration_bounds = array<i64: 1, 1>, scalar_prefetch = 0 : i64, scratch_operands = 0 : i64, tpu.core_type = #tpu.core_type<tc>, window_params = [{transform_indices = @transform_0, window_bounds = array<i64: 128, 16>}, {transform_indices = @transform_1, window_bounds = array<i64: 128, 16>}, {transform_indices = @transform_2, window_bounds = array<i64: 128, 128>}]} {
    %c0 = arith.constant 0 : index
    %c0_0 = arith.constant 0 : index
    %0 = vector.load %arg2[%c0, %c0_0] : memref<128x16xf32, #tpu.memory_space<vmem>>, vector<128x16xf32>
    %c0_1 = arith.constant 0 : index
    %c0_2 = arith.constant 0 : index
    %1 = vector.load %arg3[%c0_1, %c0_2] : memref<128x16xf32, #tpu.memory_space<vmem>>, vector<128x16xf32>
    %cst = arith.constant dense<0.000000e+00> : vector<128x128xf32>
    %2 = tpu.matmul %0, %1, %cst {dimension_numbers = #tpu.dot_dimension_numbers<[1], [1], [0], [0], [0, 0, 1, 0], [], []>} : vector<128x16xf32>, vector<128x16xf32>, vector<128x128xf32> -> vector<128x128xf32>
    %3 = arith.negf %2 : vector<128x128xf32>
    %4 = math.exp %3 : vector<128x128xf32>
    %cst_3 = arith.constant 1.000000e+00 : f32
    %5 = vector.broadcast %cst_3 : f32 to vector<128x128xf32>
    %6 = arith.addf %5, %4 : vector<128x128xf32>
    %7 = arith.divf %5, %6 : vector<128x128xf32>
    %c0_4 = arith.constant 0 : index
    %c0_5 = arith.constant 0 : index
    %8 = vector.load %arg4[%c0_4, %c0_5] : memref<128x128xf32, #tpu.memory_space<vmem>>, vector<128x128xf32>
    tpu.vector_store %arg4[%c0_4, %c0_5], %7 {strides = array<i32>} : memref<128x128xf32, #tpu.memory_space<vmem>>, vector<128x128xf32>,
    return
  }
  func.func @transform_0(%arg0: i32, %arg1: i32) -> (i32, i32) {
    %c0_i32 = arith.constant 0 : i32
    %c0_i32_0 = arith.constant 0 : i32
    return %arg0, %c0_i32 : i32, i32
  }
  func.func @transform_1(%arg0: i32, %arg1: i32) -> (i32, i32) {
    %c0_i32 = arith.constant 0 : i32
    %c0_i32_0 = arith.constant 0 : i32
    return %arg1, %c0_i32 : i32, i32
  }
  func.func @transform_2(%arg0: i32, %arg1: i32) -> (i32, i32) {
    %c0_i32 = arith.constant 0 : i32
    return %arg0, %arg1 : i32, i32
  }
}

</mosaic_0001>

<bundles_post_ra>
// kernel: multi_head_gcn_gvae_forward.4
= control target key start
LH: loop header
LB: loop body
LE: loop exit
PB: predicated region body
PF: predicated region fallthrough
CT: control target
= control target key end

     0   :  { %v640_v1 = vmov 0   ;;  %s872_s1 = inlined_call_operand.vmem [shape: bf16[128,128], index: 1, kind: input, shape index: {}, may-alias: {1,2}]   ;;  %s873_s3 = inlined_call_operand.vmem [shape: f32[128,1], index: 3, kind: input, shape index: {}]   ;;  %s874_s4 = inlined_call_operand.vmem [shape: f32[1,128], index: 4, kind: input, shape index: {}]   ;;  %s875_s0 = inlined_call_operand.vmem [shape: bf16[128,128], index: 0, kind: input, shape index: {}]   ;;  %s876_s2 = inlined_call_operand.vmem [shape: bf16[128,128], index: 2, kind: input, shape index: {}, may-alias: {1,2}]   ;;  %s877_s5 = inlined_call_operand.vmem [shape: f32[128,128], index: 5, kind: output, shape index: {}]  }
   0x1   :  { %v562_v0 = vld [vmem:[%s872_s1 + $0x38] sm:$0xff]  ;;  %636 = vset.pattern.permute.xlu0 %v640_v1  ;;  %v273_v2 = vld [vmem:[%s873_s3] sm:$0xff]  ;;  %637 = vset.pattern.permute.xlu1 %v640_v1  ;;  %v561_v3 = vld [vmem:[%s872_s1 + $0x30] sm:$0xff] }
   0x2   :  { %355 = vperm.xlu0 %636, %v273_v2   ;;  %638 = vset.pattern.permute.xlu2 %v640_v1  ;;  %v275_v4 = vld [vmem:[%s873_s3 + $0x10] sm:$0xff]  ;;  %v560_v5 = vld [vmem:[%s872_s1 + $0x28] sm:$0xff]  ;;  %v277_v7 = vld [vmem:[%s873_s3 + $0x20] sm:$0xff] }
   0x3   :  { %189 = vmatpush.bf16.msra.mxu0 %v562_v0  ;;  %610 = vmatpush.bf16.msra.mxu1 %v562_v0  ;;  %v274_v6 = vld [vmem:[%s873_s3 + $0x8] sm:$0xff]  ;;  %v276_v8 = vld [vmem:[%s873_s3 + $0x18] sm:$0xff]  ;;  %v559_v9 = vld [vmem:[%s872_s1 + $0x20] sm:$0xff] }
   0x4   :  { %611 = vmatpush.bf16.msra.mxu2 %v562_v0  ;;  %612 = vmatpush.bf16.msra.mxu3 %v562_v0  ;;  %v558_v10 = vld [vmem:[%s872_s1 + $0x18] sm:$0xff]  ;;  %v279_v11 = vld [vmem:[%s873_s3 + $0x30] sm:$0xff]  ;;  %v278_v12 = vld [vmem:[%s873_s3 + $0x28] sm:$0xff] }
   0x5   :  { %365 = vperm.xlu1 %637, %v275_v4   ;;  %375 = vperm.xlu2 %638, %v277_v7   ;;  %v280_v13 = vld [vmem:[%s873_s3 + $0x38] sm:$0xff]  ;;  %v557_v14 = vld [vmem:[%s872_s1 + $0x10] sm:$0xff]  ;;  %v281_v15 = vld [vmem:[%s873_s3 + $0x40] sm:$0xff] }
   0x6   :  { %v556_v16 = vld [vmem:[%s872_s1 + $0x8] sm:$0xff]  ;;  %v283_v18 = vld [vmem:[%s873_s3 + $0x50] sm:$0xff]  ;;  %v555_v19 = vld [vmem:[%s872_s1] sm:$0xff] }
   0x7   :  { %190 = vmatpush.bf16.msra.mxu0 %v561_v3  ;;  %613 = vmatpush.bf16.msra.mxu1 %v561_v3  ;;  %v282_v17 = vld [vmem:[%s873_s3 + $0x48] sm:$0xff]  ;;  %v563_v20 = vld [vmem:[%s875_s0] sm:$0xff]  ;;  %v565_v21 = vld [vmem:[%s875_s0 + $0x10] sm:$0xff] }
   0x8   :  { %614 = vmatpush.bf16.msra.mxu2 %v561_v3  ;;  %615 = vmatpush.bf16.msra.mxu3 %v561_v3  ;;  %v284_v22 = vld [vmem:[%s873_s3 + $0x58] sm:$0xff]  ;;  %v567_v23 = vld [vmem:[%s875_s0 + $0x20] sm:$0xff]  ;;  %v569_v24 = vld [vmem:[%s875_s0 + $0x30] sm:$0xff] }
   0x9   :  { %v285_v25 = vld [vmem:[%s873_s3 + $0x60] sm:$0xff]  ;;  %v286_v26 = vld [vmem:[%s873_s3 + $0x68] sm:$0xff]  ;;  %v287_v27 = vld [vmem:[%s873_s3 + $0x70] sm:$0xff] }
   0xa   :  { %360 = vperm.xlu0 %636, %v274_v6   ;;  %v288_v28 = vld [vmem:[%s873_s3 + $0x78] sm:$0xff]  ;;  %v564_v29 = vld [vmem:[%s875_s0 + $0x8] sm:$0xff]  ;;  %v572_v40 = vld [vmem:[%s876_s2] sm:$0xff]  }
   0xb   :  { %191 = vmatpush.bf16.msra.mxu0 %v560_v5  ;;  %616 = vmatpush.bf16.msra.mxu1 %v560_v5  ;;  %v566_v30 = vld [vmem:[%s875_s0 + $0x18] sm:$0xff]  ;;  %v568_v31 = vld [vmem:[%s875_s0 + $0x28] sm:$0xff]  ;;  %v604_v41 = vld [vmem:[%s876_s2 + $0x10] sm:$0xff]   ;;  %v573_v43 = vunpack.c.l.bf16 %v572_v40  ;;  %v574_v62 = vunpack.c.h.bf16 %v572_v40 }
   0xc   :  { %617 = vmatpush.bf16.msra.mxu2 %v560_v5  ;;  %618 = vmatpush.bf16.msra.mxu3 %v560_v5  ;;  %v570_v32 = vld [vmem:[%s875_s0 + $0x38] sm:$0xff]  ;;  %v581_v44 = vunpack.c.l.bf16 %v604_v41  ;;  %v784_v49 = vld [vmem:[%s874_s4] ss:$0 sm:$0xff]  ;;  %v608_v52 = vld [vmem:[%s876_s2 + $0x30] sm:$0xff]   ;;  %v582_v63 = vunpack.c.h.bf16 %v604_v41 }
   0xd   :  { %370 = vperm.xlu1 %637, %v276_v8   ;;  %380 = vperm.xlu2 %638, %v278_v12   ;;  %v606_v51 = vld [vmem:[%s876_s2 + $0x20] sm:$0xff]   ;;  %v597_v57 = vunpack.c.l.bf16 %v608_v52 }
   0xe   :  { %v589_v56 = vunpack.c.l.bf16 %v606_v51 }
   0xf   :  { %192 = vmatpush.bf16.msra.mxu0 %v559_v9  ;;  %619 = vmatpush.bf16.msra.mxu1 %v559_v9 }
  0x10   :  { %620 = vmatpush.bf16.msra.mxu2 %v559_v9  ;;  %621 = vmatpush.bf16.msra.mxu3 %v559_v9 }
  0x12   :  { %385 = vperm.xlu0 %636, %v279_v11   ;;  %v605_v11 = vld [vmem:[%s876_s2 + $0x18] sm:$0xff]  }
  0x13   :  { %193 = vmatpush.bf16.msra.mxu0 %v558_v10  ;;  %622 = vmatpush.bf16.msra.mxu1 %v558_v10 }
  0x14   :  { %623 = vmatpush.bf16.msra.mxu2 %v558_v10  ;;  %624 = vmatpush.bf16.msra.mxu3 %v558_v10  ;;  %v603_v10 = vld [vmem:[%s876_s2 + $0x8] sm:$0xff]  }
  0x15   :  { %390 = vperm.xlu1 %637, %v280_v13   ;;  %395 = vperm.xlu2 %638, %v281_v15  }
  0x17   :  { %194 = vmatpush.bf16.msra.mxu0 %v557_v14  ;;  %625 = vmatpush.bf16.msra.mxu1 %v557_v14 }
  0x18   :  { %626 = vmatpush.bf16.msra.mxu2 %v557_v14  ;;  %627 = vmatpush.bf16.msra.mxu3 %v557_v14 }
  0x1a   :  { %400 = vperm.xlu0 %636, %v282_v17   ;;  %v598_v17 = vunpack.c.h.bf16 %v608_v52  ;;  %v578_v52 = vunpack.c.h.bf16 %v603_v10 }
  0x1b   :  { %195 = vmatpush.bf16.msra.mxu0 %v556_v16  ;;  %628 = vmatpush.bf16.msra.mxu1 %v556_v16 }
  0x1c   :  { %629 = vmatpush.bf16.msra.mxu2 %v556_v16  ;;  %630 = vmatpush.bf16.msra.mxu3 %v556_v16  ;;  %v590_v16 = vunpack.c.h.bf16 %v606_v51 }
  0x1d   :  { %405 = vperm.xlu1 %637, %v283_v18   ;;  %410 = vperm.xlu2 %638, %v284_v22   ;;  %v577_v22 = vunpack.c.l.bf16 %v603_v10 }
  0x1f   :  { %196 = vmatpush.bf16.msra.mxu0 %v555_v19  ;;  %631 = vmatpush.bf16.msra.mxu1 %v555_v19 }
  0x20   :  { %632 = vmatpush.bf16.msra.mxu2 %v555_v19  ;;  %633 = vmatpush.bf16.msra.mxu3 %v555_v19 }
  0x22   :  { %197 = vmatmul.bf16.vlgmr.msra.gmra.mxu0 %v563_v20  ;;  %207 = vmatmul.bf16.vlgmr.msra.gmra.mxu1 %v565_v21 }
  0x23   :  { %217 = vmatmul.bf16.vlgmr.msra.gmra.mxu2 %v567_v23  ;;  %227 = vmatmul.bf16.vlgmr.msra.gmra.mxu3 %v569_v24  ;;  %v585_v23 = vunpack.c.l.bf16 %v605_v11 }
  0x24   :  { %415 = vperm.xlu0 %636, %v285_v25  }
  0x25   :  { %420 = vperm.xlu1 %637, %v286_v26   ;;  %425 = vperm.xlu2 %638, %v287_v27  }
  0x2c   :  { %430 = vperm.xlu0 %636, %v288_v28  }
  0x32   :  { %202 = vmatmul.bf16.gmra.mxu0 %v564_v29  ;;  %212 = vmatmul.bf16.gmra.mxu1 %v566_v30 }
  0x33   :  { %222 = vmatmul.bf16.gmra.mxu2 %v568_v31  ;;  %232 = vmatmul.bf16.gmra.mxu3 %v570_v32  ;;  %v607_v32 = vld [vmem:[%s876_s2 + $0x28] sm:$0xff]  }
  0x5f   :  { %v376_v36 = vpop.permute.xlu2 %375 }
  0x67   :  { %v381_v39 = vpop.permute.xlu2 %380 }
  0x6f   :  { %v396_v55 = vpop.permute.xlu2 %395 }
  0x74   :  { %v356_v33 = vpop.permute.xlu0 %355 }
  0x77   :  { %v767_v34 = vpop.permute.xlu1 %365  ;;  %v411_v26 = vpop.permute.xlu2 %410 }
  0x7c   :  { %v361_v35 = vpop.permute.xlu0 %360 }
  0x7f   :  { %v769_v37 = vpop.permute.xlu1 %370 }
  0x84   :  { %v771_v38 = vpop.permute.xlu0 %385 }
  0x87   :  { %v779_v42 = vpop.permute.xlu1 %390 }
  0x8c   :  { %v401_v47 = vpop.permute.xlu0 %400 }
  0x8f   :  { %v406_v2 = vpop.permute.xlu1 %405 }
  0x96   :  { %v416_v5 = vpop.permute.xlu0 %415 }
  0x97   :  { %v421_v29 = vpop.permute.xlu1 %420 }
  0x9f   :  { %v198_v45 = vpop.f32.mrf.mxu0  ;;  %v208_v46 = vpop.f32.mrf.mxu1 }
  0xa0   :  { %v337_v48 = vadd.f32 %v573_v43, %v198_v45  ;;  %v341_v50 = vadd.f32 %v581_v44, %v208_v46  ;;  %v593_v44 = vunpack.c.l.bf16 %v607_v32 }
  0xa2   :  { %v433_v53 = vmul.f32 %v356_v33, %v337_v48  ;;  %v437_v54 = vmul.f32 %v376_v36, %v341_v50  ;;  %v609_v33 = vld [vmem:[%s876_s2 + $0x38] sm:$0xff]  }
  0xa3   :  { %v601_v45 = vunpack.c.l.bf16 %v609_v33 }
  0xa4   :  { %v453_v58 = vadd.f32 %v784_v49, %v433_v53  ;;  %v457_v59 = vadd.f32 %v784_v49, %v437_v54  ;;  %v586_v53 = vunpack.c.h.bf16 %v605_v11 }
  0xa6   :  { %v218_v60 = vpop.f32.mrf.mxu2  ;;  %v228_v61 = vpop.f32.mrf.mxu3  ;;  %469 = vst [vmem:[%s877_s5] sm:$0xff] %v453_v58 }
  0xa7   :  { %v200_v0 = vpop.f32.mrf.mxu0  ;;  %v210_v1 = vpop.f32.mrf.mxu1  ;;  %473 = vst [vmem:[%s877_s5 + $0x20] sm:$0xff] %v457_v59  ;;  %v345_v3 = vadd.f32 %v589_v56, %v218_v60  ;;  %v349_v4 = vadd.f32 %v597_v57, %v228_v61 }
  0xa8   :  { %v338_v6 = vadd.f32 %v574_v62, %v200_v0  ;;  %v342_v7 = vadd.f32 %v582_v63, %v210_v1  ;;  %v594_v0 = vunpack.c.h.bf16 %v607_v32  ;;  %v602_v1 = vunpack.c.h.bf16 %v609_v33 }
  0xa9   :  { %v441_v8 = vmul.f32 %v396_v55, %v345_v3  ;;  %v445_v9 = vmul.f32 %v416_v5, %v349_v4  ;;  %v426_v55 = vpop.permute.xlu2 %425 }
  0xaa   :  { %v434_v12 = vmul.f32 %v361_v35, %v338_v6  ;;  %v438_v13 = vmul.f32 %v381_v39, %v342_v7 }
  0xab   :  { %v461_v14 = vadd.f32 %v784_v49, %v441_v8  ;;  %v465_v15 = vadd.f32 %v784_v49, %v445_v9 }
  0xac   :  { %v454_v18 = vadd.f32 %v784_v49, %v434_v12  ;;  %v458_v19 = vadd.f32 %v784_v49, %v438_v13 }
  0xad   :  { %477 = vst [vmem:[%s877_s5 + $0x40] sm:$0xff] %v461_v14 }
  0xae   :  { %v220_v20 = vpop.f32.mrf.mxu2  ;;  %v230_v21 = vpop.f32.mrf.mxu3  ;;  %481 = vst [vmem:[%s877_s5 + $0x60] sm:$0xff] %v465_v15 }
  0xaf   :  { %v203_v24 = vpop.f32.mrf.mxu0  ;;  %v213_v25 = vpop.f32.mrf.mxu1  ;;  %470 = vst [vmem:[%s877_s5 + $0x8] sm:$0xff] %v454_v18  ;;  %v346_v27 = vadd.f32 %v590_v16, %v220_v20  ;;  %v350_v28 = vadd.f32 %v598_v17, %v230_v21 }
  0xb0   :  { %474 = vst [vmem:[%s877_s5 + $0x28] sm:$0xff] %v458_v19  ;;  %v339_v30 = vadd.f32 %v577_v22, %v203_v24  ;;  %v343_v31 = vadd.f32 %v585_v23, %v213_v25 }
  0xb1   :  { %v442_v35 = vmul.f32 %v401_v47, %v346_v27  ;;  %v446_v36 = vmul.f32 %v421_v29, %v350_v28 }
  0xb2   :  { %v435_v39 = vmul.f32 %v767_v34, %v339_v30  ;;  %v439_v40 = vmul.f32 %v771_v38, %v343_v31 }
  0xb3   :  { %v462_v41 = vadd.f32 %v784_v49, %v442_v35  ;;  %v466_v43 = vadd.f32 %v784_v49, %v446_v36 }
  0xb4   :  { %v455_v46 = vadd.f32 %v784_v49, %v435_v39  ;;  %v459_v48 = vadd.f32 %v784_v49, %v439_v40 }
  0xb5   :  { %478 = vst [vmem:[%s877_s5 + $0x48] sm:$0xff] %v462_v41 }
  0xb6   :  { %v223_v50 = vpop.f32.mrf.mxu2  ;;  %v233_v51 = vpop.f32.mrf.mxu3  ;;  %482 = vst [vmem:[%s877_s5 + $0x68] sm:$0xff] %v466_v43 }
  0xb7   :  { %v205_v34 = vpop.f32.mrf.mxu0  ;;  %v215_v38 = vpop.f32.mrf.mxu1  ;;  %471 = vst [vmem:[%s877_s5 + $0x10] sm:$0xff] %v455_v46  ;;  %v347_v47 = vadd.f32 %v593_v44, %v223_v50  ;;  %v351_v54 = vadd.f32 %v601_v45, %v233_v51 }
  0xb8   :  { %475 = vst [vmem:[%s877_s5 + $0x30] sm:$0xff] %v459_v48  ;;  %v340_v56 = vadd.f32 %v578_v52, %v205_v34  ;;  %v344_v57 = vadd.f32 %v586_v53, %v215_v38 }
  0xb9   :  { %v443_v58 = vmul.f32 %v406_v2, %v347_v47  ;;  %v447_v59 = vmul.f32 %v426_v55, %v351_v54  ;;  %v431_v2 = vpop.permute.xlu0 %430 }
  0xba   :  { %v436_v60 = vmul.f32 %v769_v37, %v340_v56  ;;  %v440_v61 = vmul.f32 %v779_v42, %v344_v57 }
  0xbb   :  { %v463_v62 = vadd.f32 %v784_v49, %v443_v58  ;;  %v467_v63 = vadd.f32 %v784_v49, %v447_v59 }
  0xbc   :  { %v456_v3 = vadd.f32 %v784_v49, %v436_v60  ;;  %v460_v4 = vadd.f32 %v784_v49, %v440_v61 }
  0xbd   :  { %479 = vst [vmem:[%s877_s5 + $0x50] sm:$0xff] %v463_v62 }
  0xbe   :  { %v225_v5 = vpop.f32.mrf.mxu2  ;;  %v235_v6 = vpop.f32.mrf.mxu3  ;;  %483 = vst [vmem:[%s877_s5 + $0x70] sm:$0xff] %v467_v63 }
  0xbf   :  { %472 = vst [vmem:[%s877_s5 + $0x18] sm:$0xff] %v456_v3  ;;  %v348_v37 = vadd.f32 %v594_v0, %v225_v5  ;;  %v352_v42 = vadd.f32 %v602_v1, %v235_v6 }
  0xc0   :  { %476 = vst [vmem:[%s877_s5 + $0x38] sm:$0xff] %v460_v4 }
  0xc1   :  { %v444_v7 = vmul.f32 %v411_v26, %v348_v37  ;;  %v448_v8 = vmul.f32 %v431_v2, %v352_v42 }
  0xc3   :  { %v464_v9 = vadd.f32 %v784_v49, %v444_v7  ;;  %v468_v10 = vadd.f32 %v784_v49, %v448_v8 }
  0xc5   :  { %480 = vst [vmem:[%s877_s5 + $0x58] sm:$0xff] %v464_v9 }
  0xc6   :  { %484 = vst [vmem:[%s877_s5 + $0x78] sm:$0xff] %v468_v10 }

// kernel: multi_head_gcn_gvae_forward.3
= control target key start
LH: loop header
LB: loop body
LE: loop exit
PB: predicated region body
PF: predicated region fallthrough
CT: control target
= control target key end

     0   :  { %v818_v1 = vmov 0   ;;  %s1123_s1 = inlined_call_operand.vmem [shape: bf16[128,128], index: 1, kind: input, shape index: {}, may-alias: {1,2}]   ;;  %s1124_s3 = inlined_call_operand.vmem [shape: f32[128,1], index: 3, kind: input, shape index: {}]   ;;  %s1125_s0 = inlined_call_operand.vmem [shape: bf16[128,128], index: 0, kind: input, shape index: {}]   ;;  %s1126_s4 = inlined_call_operand.vmem [shape: f32[1,128], index: 4, kind: input, shape index: {}]   ;;  %s1127_s5 = inlined_call_operand.vmem [shape: f32[128,128], index: 5, kind: input, shape index: {}]   ;;  %s1128_s2 = inlined_call_operand.vmem [shape: bf16[128,128], index: 2, kind: input, shape index: {}, may-alias: {1,2}]   ;;  %s1129_s6 = inlined_call_operand.vmem [shape: bf16[128,128], index: 6, kind: output, shape index: {}]  }
   0x1   :  { %v694_v0 = vld [vmem:[%s1123_s1 + $0x38] sm:$0xff]  ;;  %814 = vset.pattern.permute.xlu0 %v818_v1  ;;  %v284_v2 = vld [vmem:[%s1124_s3 + $0x40] sm:$0xff]  ;;  %815 = vset.pattern.permute.xlu1 %v818_v1  ;;  %v693_v3 = vld [vmem:[%s1123_s1 + $0x30] sm:$0xff] }
   0x2   :  { %398 = vperm.xlu0 %814, %v284_v2   ;;  %816 = vset.pattern.permute.xlu2 %v818_v1  ;;  %v285_v4 = vld [vmem:[%s1124_s3 + $0x48] sm:$0xff]  ;;  %v276_v6 = vld [vmem:[%s1124_s3] sm:$0xff]  ;;  %v690_v9 = vld [vmem:[%s1123_s1 + $0x18] sm:$0xff] }
   0x3   :  { %192 = vmatpush.bf16.msra.mxu0 %v694_v0  ;;  %789 = vmatpush.bf16.msra.mxu2 %v694_v0  ;;  %v692_v5 = vld [vmem:[%s1123_s1 + $0x28] sm:$0xff]  ;;  %v691_v8 = vld [vmem:[%s1123_s1 + $0x20] sm:$0xff]  ;;  %v287_v10 = vld [vmem:[%s1124_s3 + $0x58] sm:$0xff] }
   0x4   :  { %403 = vperm.xlu1 %815, %v285_v4   ;;  %v277_v7 = vld [vmem:[%s1124_s3 + $0x8] sm:$0xff]  ;;  %v279_v11 = vld [vmem:[%s1124_s3 + $0x18] sm:$0xff]  ;;  %v286_v12 = vld [vmem:[%s1124_s3 + $0x50] sm:$0xff] }
   0x5   :  { %v689_v13 = vld [vmem:[%s1123_s1 + $0x10] sm:$0xff]  ;;  %408 = vperm.xlu2 %816, %v286_v12   ;;  %v688_v14 = vld [vmem:[%s1123_s1 + $0x8] sm:$0xff]  ;;  %v280_v15 = vld [vmem:[%s1124_s3 + $0x20] sm:$0xff] }
   0x6   :  { %v289_v16 = vld [vmem:[%s1124_s3 + $0x68] sm:$0xff]  ;;  %v687_v17 = vld [vmem:[%s1123_s1] sm:$0xff]  ;;  %v290_v20 = vld [vmem:[%s1124_s3 + $0x70] sm:$0xff] }
   0x7   :  { %193 = vmatpush.bf16.msra.mxu0 %v693_v3  ;;  %790 = vmatpush.bf16.msra.mxu2 %v693_v3  ;;  %v695_v18 = vld [vmem:[%s1125_s0] sm:$0xff]  ;;  %v282_v21 = vld [vmem:[%s1124_s3 + $0x30] sm:$0xff]  ;;  %v283_v23 = vld [vmem:[%s1124_s3 + $0x38] sm:$0xff] }
   0x8   :  { %v699_v19 = vld [vmem:[%s1125_s0 + $0x20] sm:$0xff]  ;;  %v278_v22 = vld [vmem:[%s1124_s3 + $0x10] sm:$0xff]  ;;  %v696_v25 = vld [vmem:[%s1125_s0 + $0x8] sm:$0xff] }
   0x9   :  { %v288_v24 = vld [vmem:[%s1124_s3 + $0x60] sm:$0xff]  ;;  %v700_v26 = vld [vmem:[%s1125_s0 + $0x28] sm:$0xff]  ;;  %v291_v28 = vld [vmem:[%s1124_s3 + $0x78] sm:$0xff] }
   0xa   :  { %358 = vperm.xlu0 %814, %v276_v6   ;;  %v281_v27 = vld [vmem:[%s1124_s3 + $0x28] sm:$0xff]  ;;  %v697_v29 = vld [vmem:[%s1125_s0 + $0x10] sm:$0xff]  ;;  %v698_v31 = vld [vmem:[%s1125_s0 + $0x18] sm:$0xff] }
   0xb   :  { %194 = vmatpush.bf16.msra.mxu0 %v692_v5  ;;  %791 = vmatpush.bf16.msra.mxu2 %v692_v5  ;;  %v701_v30 = vld [vmem:[%s1125_s0 + $0x30] sm:$0xff]  ;;  %v702_v32 = vld [vmem:[%s1125_s0 + $0x38] sm:$0xff]  ;;  %v501_v35 = vld [vmem:[%s1127_s5 + $0x68] sm:$0xff] }
   0xc   :  { %363 = vperm.xlu1 %815, %v277_v7   ;;  %v503_v33 = vld [vmem:[%s1127_s5 + $0x78] sm:$0xff]  ;;  %v502_v34 = vld [vmem:[%s1127_s5 + $0x70] sm:$0xff]  ;;  %v500_v36 = vld [vmem:[%s1127_s5 + $0x60] sm:$0xff] }
   0xd   :  { %368 = vperm.xlu2 %816, %v278_v22   ;;  %504 = vmatpush.msra.mxu1 %v503_v33  ;;  %v499_v37 = vld [vmem:[%s1127_s5 + $0x58] sm:$0xff]  ;;  %v498_v38 = vld [vmem:[%s1127_s5 + $0x50] sm:$0xff]  ;;  %v497_v39 = vld [vmem:[%s1127_s5 + $0x48] sm:$0xff] }
   0xe   :  { %797 = vmatpush.msra.mxu3 %v503_v33  ;;  %v496_v40 = vld [vmem:[%s1127_s5 + $0x40] sm:$0xff]  ;;  %v495_v41 = vld [vmem:[%s1127_s5 + $0x38] sm:$0xff]  ;;  %v494_v42 = vld [vmem:[%s1127_s5 + $0x30] sm:$0xff] }
   0xf   :  { %195 = vmatpush.bf16.msra.mxu0 %v691_v8  ;;  %792 = vmatpush.bf16.msra.mxu2 %v691_v8  ;;  %v493_v43 = vld [vmem:[%s1127_s5 + $0x28] sm:$0xff]  ;;  %v492_v44 = vld [vmem:[%s1127_s5 + $0x20] sm:$0xff]  ;;  %v491_v45 = vld [vmem:[%s1127_s5 + $0x18] sm:$0xff] }
  0x10   :  { %505 = vmatpush.msra.mxu1 %v502_v34  ;;  %798 = vmatpush.msra.mxu3 %v502_v34  ;;  %v490_v46 = vld [vmem:[%s1127_s5 + $0x10] sm:$0xff]  ;;  %v489_v47 = vld [vmem:[%s1127_s5 + $0x8] sm:$0xff]  ;;  %v488_v48 = vld [vmem:[%s1127_s5] sm:$0xff] }
  0x11   :  { %v704_v50 = vld [vmem:[%s1128_s2] sm:$0xff]   ;;  %v775_v6 = vld [vmem:[%s1128_s2 + $0x8] sm:$0xff]  }
  0x12   :  { %413 = vperm.xlu0 %814, %v287_v10   ;;  %506 = vmatpush.msra.mxu1 %v501_v35  ;;  %v705_v51 = vunpack.c.l.bf16 %v704_v50  ;;  %v778_v54 = vld [vmem:[%s1128_s2 + $0x20] sm:$0xff]   ;;  %v706_v60 = vunpack.c.h.bf16 %v704_v50 }
  0x13   :  { %196 = vmatpush.bf16.msra.mxu0 %v690_v9  ;;  %793 = vmatpush.bf16.msra.mxu2 %v690_v9  ;;  %v1011_v56 = vld [vmem:[%s1126_s4] ss:$0 sm:$0xff]  ;;  %v721_v59 = vunpack.c.l.bf16 %v778_v54  ;;  %v722_v8 = vunpack.c.h.bf16 %v778_v54 }
  0x14   :  { %373 = vperm.xlu1 %815, %v279_v11   ;;  %799 = vmatpush.msra.mxu3 %v501_v35  ;;  %v709_v11 = vunpack.c.l.bf16 %v775_v6  ;;  %v776_v35 = vld [vmem:[%s1128_s2 + $0x10] sm:$0xff]  }
  0x15   :  { %418 = vperm.xlu2 %816, %v288_v24   ;;  %507 = vmatpush.msra.mxu1 %v500_v36 }
  0x16   :  { %800 = vmatpush.msra.mxu3 %v500_v36 }
  0x17   :  { %197 = vmatpush.bf16.msra.mxu0 %v689_v13  ;;  %794 = vmatpush.bf16.msra.mxu2 %v689_v13 }
  0x18   :  { %508 = vmatpush.msra.mxu1 %v499_v37  ;;  %801 = vmatpush.msra.mxu3 %v499_v37 }
  0x1a   :  { %378 = vperm.xlu0 %814, %v280_v15   ;;  %509 = vmatpush.msra.mxu1 %v498_v38 }
  0x1b   :  { %198 = vmatpush.bf16.msra.mxu0 %v688_v14  ;;  %795 = vmatpush.bf16.msra.mxu2 %v688_v14 }
  0x1c   :  { %423 = vperm.xlu1 %815, %v289_v16   ;;  %802 = vmatpush.msra.mxu3 %v498_v38 }
  0x1d   :  { %383 = vperm.xlu2 %816, %v281_v27   ;;  %510 = vmatpush.msra.mxu1 %v497_v39 }
  0x1e   :  { %803 = vmatpush.msra.mxu3 %v497_v39 }
  0x1f   :  { %199 = vmatpush.bf16.msra.mxu0 %v687_v17  ;;  %796 = vmatpush.bf16.msra.mxu2 %v687_v17  ;;  %v779_v17 = vld [vmem:[%s1128_s2 + $0x28] sm:$0xff]  }
  0x20   :  { %511 = vmatpush.msra.mxu1 %v496_v40  ;;  %804 = vmatpush.msra.mxu3 %v496_v40  ;;  %v725_v22 = vunpack.c.l.bf16 %v779_v17  ;;  %v726_v37 = vunpack.c.h.bf16 %v779_v17  ;;  %v713_v40 = vunpack.c.l.bf16 %v776_v35 }
  0x22   :  { %200 = vmatmul.bf16.vlgmr.msra.gmra.mxu0 %v695_v18  ;;  %220 = vmatmul.bf16.vlgmr.msra.gmra.mxu2 %v699_v19 }
  0x23   :  { %428 = vperm.xlu0 %814, %v290_v20   ;;  %512 = vmatpush.msra.mxu1 %v495_v41 }
  0x24   :  { %388 = vperm.xlu1 %815, %v282_v21   ;;  %805 = vmatpush.msra.mxu3 %v495_v41 }
  0x25   :  { %433 = vperm.xlu2 %816, %v291_v28   ;;  %513 = vmatpush.msra.mxu1 %v494_v42 }
  0x26   :  { %806 = vmatpush.msra.mxu3 %v494_v42 }
  0x27   :  { %514 = vmatpush.msra.mxu1 %v493_v43 }
  0x28   :  { %807 = vmatpush.msra.mxu3 %v493_v43 }
  0x29   :  { %515 = vmatpush.msra.mxu1 %v492_v44 }
  0x2a   :  { %808 = vmatpush.msra.mxu3 %v492_v44 }
  0x2b   :  { %393 = vperm.xlu0 %814, %v283_v23   ;;  %516 = vmatpush.msra.mxu1 %v491_v45 }
  0x2c   :  { %809 = vmatpush.msra.mxu3 %v491_v45 }
  0x2d   :  { %517 = vmatpush.msra.mxu1 %v490_v46 }
  0x2e   :  { %810 = vmatpush.msra.mxu3 %v490_v46 }
  0x2f   :  { %518 = vmatpush.msra.mxu1 %v489_v47 }
  0x30   :  { %811 = vmatpush.msra.mxu3 %v489_v47  ;;  %v780_v47 = vld [vmem:[%s1128_s2 + $0x30] sm:$0xff]  }
  0x31   :  { %519 = vmatpush.msra.mxu1 %v488_v48  ;;  %v729_v54 = vunpack.c.l.bf16 %v780_v47 }
  0x32   :  { %205 = vmatmul.bf16.gmra.mxu0 %v696_v25  ;;  %225 = vmatmul.bf16.gmra.mxu2 %v700_v26  ;;  %v710_v25 = vunpack.c.h.bf16 %v775_v6 }
  0x33   :  { %812 = vmatpush.msra.mxu3 %v488_v48 }
  0x42   :  { %210 = vmatmul.bf16.gmra.mxu0 %v697_v29  ;;  %230 = vmatmul.bf16.gmra.mxu2 %v701_v30 }
  0x52   :  { %215 = vmatmul.bf16.gmra.mxu0 %v698_v31  ;;  %235 = vmatmul.bf16.gmra.mxu2 %v702_v32 }
  0x5f   :  { %v1017_v1 = vpop.permute.xlu2 %408 }
  0x67   :  { %v1032_v20 = vpop.permute.xlu2 %368 }
  0x6f   :  { %v1048_v45 = vpop.permute.xlu2 %418 }
  0x74   :  { %v998_v49 = vpop.permute.xlu0 %398 }
  0x76   :  { %v1003_v52 = vpop.permute.xlu1 %403 }
  0x77   :  { %v1062_v6 = vpop.permute.xlu2 %383 }
  0x7c   :  { %v1013_v57 = vpop.permute.xlu0 %358 }
  0x7e   :  { %v1020_v5 = vpop.permute.xlu1 %363 }
  0x84   :  { %v1037_v30 = vpop.permute.xlu0 %413 }
  0x86   :  { %v1040_v34 = vpop.permute.xlu1 %373 }
  0x9f   :  { %v201_v53 = vpop.f32.mrf.mxu0 }
  0xa0   :  { %v340_v55 = vadd.f32 %v705_v51, %v201_v53  ;;  %v1054_v51 = vpop.permute.xlu0 %378 }
  0xa2   :  { %v436_v58 = vmul.f32 %v1013_v57, %v340_v55 }
  0xa4   :  { %v456_v61 = vadd.f32 %v1011_v56, %v436_v58 }
  0xa5   :  { %v221_v62 = vpop.f32.mrf.mxu2 }
  0xa6   :  { %v348_v63 = vadd.f32 %v721_v59, %v221_v62  ;;  %v472_v0 = vmax.f32 %v456_v61, 0.0  ;;  %v714_v59 = vunpack.c.h.bf16 %v776_v35 }
  0xa7   :  { %v203_v2 = vpop.f32.mrf.mxu0 }
  0xa8   :  { %v444_v3 = vmul.f32 %v998_v49, %v348_v63  ;;  %v341_v4 = vadd.f32 %v706_v60, %v203_v2  ;;  %520 = vmatmul.f32.vlgmr.msra.gmra.mxu1 %v472_v0  ;;  %v1059_v0 = vpop.permute.xlu1 %423  ;;  %v1070_v17 = vpop.permute.xlu0 %428 }
  0xaa   :  { %v437_v7 = vmul.f32 %v1020_v5, %v341_v4  ;;  %v464_v9 = vadd.f32 %v1011_v56, %v444_v3 }
  0xac   :  { %v480_v10 = vmax.f32 %v464_v9, 0.0  ;;  %v457_v12 = vadd.f32 %v1011_v56, %v437_v7  ;;  %v777_v7 = vld [vmem:[%s1128_s2 + $0x18] sm:$0xff]   ;;  %v730_v9 = vunpack.c.h.bf16 %v780_v47 }
  0xad   :  { %v223_v13 = vpop.f32.mrf.mxu2 }
  0xae   :  { %v349_v14 = vadd.f32 %v722_v8, %v223_v13  ;;  %544 = vmatmul.f32.vlgmr.msra.gmra.mxu3 %v480_v10  ;;  %v473_v15 = vmax.f32 %v457_v12, 0.0  ;;  %v717_v12 = vunpack.c.l.bf16 %v777_v7 }
  0xaf   :  { %v206_v16 = vpop.f32.mrf.mxu0 }
  0xb0   :  { %v445_v18 = vmul.f32 %v1003_v52, %v349_v14  ;;  %v342_v19 = vadd.f32 %v709_v11, %v206_v16  ;;  %523 = vmatmul.f32.gmra.mxu1 %v473_v15 }
  0xb2   :  { %v438_v21 = vmul.f32 %v1032_v20, %v342_v19  ;;  %v465_v23 = vadd.f32 %v1011_v56, %v445_v18  ;;  %v781_v19 = vld [vmem:[%s1128_s2 + $0x38] sm:$0xff]  }
  0xb4   :  { %v481_v24 = vmax.f32 %v465_v23, 0.0  ;;  %v458_v26 = vadd.f32 %v1011_v56, %v438_v21  ;;  %v1076_v23 = vpop.permute.xlu1 %388 }
  0xb5   :  { %v226_v27 = vpop.f32.mrf.mxu2 }
  0xb6   :  { %v350_v28 = vadd.f32 %v725_v22, %v226_v27  ;;  %547 = vmatmul.f32.gmra.mxu3 %v481_v24  ;;  %v474_v29 = vmax.f32 %v458_v26, 0.0 }
  0xb7   :  { %v208_v31 = vpop.f32.mrf.mxu0 }
  0xb8   :  { %v446_v32 = vmul.f32 %v1017_v1, %v350_v28  ;;  %v343_v33 = vadd.f32 %v710_v25, %v208_v31  ;;  %526 = vmatmul.f32.gmra.mxu1 %v474_v29  ;;  %v733_v25 = vunpack.c.l.bf16 %v781_v19  ;;  %v718_v28 = vunpack.c.h.bf16 %v777_v7 }
  0xba   :  { %v439_v36 = vmul.f32 %v1040_v34, %v343_v33  ;;  %v466_v38 = vadd.f32 %v1011_v56, %v446_v32 }
  0xbc   :  { %v482_v39 = vmax.f32 %v466_v38, 0.0  ;;  %v459_v41 = vadd.f32 %v1011_v56, %v439_v36  ;;  %v394_v38 = vpop.permute.xlu0 %393 }
  0xbd   :  { %v228_v42 = vpop.f32.mrf.mxu2 }
  0xbe   :  { %v351_v43 = vadd.f32 %v726_v37, %v228_v42  ;;  %550 = vmatmul.f32.gmra.mxu3 %v482_v39  ;;  %v475_v44 = vmax.f32 %v459_v41, 0.0 }
  0xbf   :  { %v211_v46 = vpop.f32.mrf.mxu0 }
  0xc0   :  { %v447_v48 = vmul.f32 %v1037_v30, %v351_v43  ;;  %v344_v50 = vadd.f32 %v713_v40, %v211_v46  ;;  %529 = vmatmul.f32.gmra.mxu1 %v475_v44  ;;  %v734_v40 = vunpack.c.h.bf16 %v781_v19 }
  0xc2   :  { %v440_v53 = vmul.f32 %v1054_v51, %v344_v50  ;;  %v467_v55 = vadd.f32 %v1011_v56, %v447_v48  ;;  %v434_v48 = vpop.permute.xlu2 %433 }
  0xc4   :  { %v483_v58 = vmax.f32 %v467_v55, 0.0  ;;  %v460_v60 = vadd.f32 %v1011_v56, %v440_v53 }
  0xc5   :  { %v231_v61 = vpop.f32.mrf.mxu2 }
  0xc6   :  { %v352_v62 = vadd.f32 %v729_v54, %v231_v61  ;;  %553 = vmatmul.f32.gmra.mxu3 %v483_v58  ;;  %v476_v63 = vmax.f32 %v460_v60, 0.0 }
  0xc7   :  { %v213_v2 = vpop.f32.mrf.mxu0 }
  0xc8   :  { %v448_v3 = vmul.f32 %v1048_v45, %v352_v62  ;;  %v345_v4 = vadd.f32 %v714_v59, %v213_v2  ;;  %532 = vmatmul.f32.gmra.mxu1 %v476_v63 }
  0xca   :  { %v441_v8 = vmul.f32 %v1062_v6, %v345_v4  ;;  %v468_v10 = vadd.f32 %v1011_v56, %v448_v3 }
  0xcc   :  { %v484_v11 = vmax.f32 %v468_v10, 0.0  ;;  %v461_v13 = vadd.f32 %v1011_v56, %v441_v8 }
  0xcd   :  { %v233_v14 = vpop.f32.mrf.mxu2 }
  0xce   :  { %v353_v15 = vadd.f32 %v730_v9, %v233_v14  ;;  %556 = vmatmul.f32.gmra.mxu3 %v484_v11  ;;  %v477_v16 = vmax.f32 %v461_v13, 0.0 }
  0xcf   :  { %v216_v18 = vpop.f32.mrf.mxu0 }
  0xd0   :  { %v449_v21 = vmul.f32 %v1059_v0, %v353_v15  ;;  %v346_v22 = vadd.f32 %v717_v12, %v216_v18  ;;  %535 = vmatmul.f32.gmra.mxu1 %v477_v16 }
  0xd2   :  { %v442_v24 = vmul.f32 %v1076_v23, %v346_v22  ;;  %v469_v26 = vadd.f32 %v1011_v56, %v449_v21 }
  0xd4   :  { %v485_v27 = vmax.f32 %v469_v26, 0.0  ;;  %v462_v29 = vadd.f32 %v1011_v56, %v442_v24 }
  0xd5   :  { %v236_v31 = vpop.f32.mrf.mxu2 }
  0xd6   :  { %v354_v32 = vadd.f32 %v733_v25, %v236_v31  ;;  %559 = vmatmul.f32.gmra.mxu3 %v485_v27  ;;  %v478_v33 = vmax.f32 %v462_v29, 0.0 }
  0xd7   :  { %v218_v35 = vpop.f32.mrf.mxu0 }
  0xd8   :  { %v450_v36 = vmul.f32 %v1070_v17, %v354_v32  ;;  %v347_v37 = vadd.f32 %v718_v28, %v218_v35  ;;  %538 = vmatmul.f32.gmra.mxu1 %v478_v33 }
  0xda   :  { %v443_v39 = vmul.f32 %v394_v38, %v347_v37  ;;  %v470_v41 = vadd.f32 %v1011_v56, %v450_v36 }
  0xdc   :  { %v486_v42 = vmax.f32 %v470_v41, 0.0  ;;  %v463_v43 = vadd.f32 %v1011_v56, %v443_v39 }
  0xdd   :  { %v238_v44 = vpop.f32.mrf.mxu2 }
  0xde   :  { %v355_v46 = vadd.f32 %v734_v40, %v238_v44  ;;  %562 = vmatmul.f32.gmra.mxu3 %v486_v42  ;;  %v479_v47 = vmax.f32 %v463_v43, 0.0 }
  0xe0   :  { %v451_v50 = vmul.f32 %v434_v48, %v355_v46  ;;  %541 = vmatmul.f32.gmra.mxu1 %v479_v47 }
  0xe2   :  { %v471_v53 = vadd.f32 %v1011_v56, %v451_v50 }
  0xe4   :  { %v487_v54 = vmax.f32 %v471_v53, 0.0 }
  0xe6   :  { %565 = vmatmul.f32.gmra.mxu3 %v487_v54 }
 0x125   :  { %v521_v55 = vpop.f32.mrf.mxu1 }
 0x126   :  { %v569_v59 = vmul.f32 %v521_v55, %v1013_v57 }
 0x12d   :  { %v524_v58 = vpop.f32.mrf.mxu1 }
 0x12e   :  { %v570_v60 = vmul.f32 %v524_v58, %v1020_v5 }
 0x130   :  { %v738_v61 = vpack.c.bf16 %v570_v60, %v569_v59 }
 0x131   :  { %v545_v62 = vpop.f32.mrf.mxu3 }
 0x132   :  { %739 = vst [vmem:[%s1129_s6] sm:$0xff] %v738_v61   ;;  %v577_v3 = vmul.f32 %v545_v62, %v998_v49 }
 0x135   :  { %v527_v63 = vpop.f32.mrf.mxu1 }
 0x136   :  { %v571_v8 = vmul.f32 %v527_v63, %v1032_v20 }
 0x139   :  { %v548_v2 = vpop.f32.mrf.mxu3 }
 0x13a   :  { %v578_v56 = vmul.f32 %v548_v2, %v1003_v52 }
 0x13c   :  { %v758_v4 = vpack.c.bf16 %v578_v56, %v577_v3 }
 0x13d   :  { %v530_v7 = vpop.f32.mrf.mxu1 }
 0x13e   :  { %785 = vst [vmem:[%s1129_s6 + $0x20] sm:$0xff] %v758_v4   ;;  %v572_v57 = vmul.f32 %v530_v7, %v1040_v34 }
 0x140   :  { %v743_v5 = vpack.c.bf16 %v572_v57, %v571_v8 }
 0x141   :  { %v551_v9 = vpop.f32.mrf.mxu3 }
 0x142   :  { %782 = vst [vmem:[%s1129_s6 + $0x8] sm:$0xff] %v743_v5   ;;  %v579_v52 = vmul.f32 %v551_v9, %v1017_v1 }
 0x145   :  { %v533_v10 = vpop.f32.mrf.mxu1 }
 0x146   :  { %v573_v13 = vmul.f32 %v533_v10, %v1054_v51 }
 0x149   :  { %v554_v49 = vpop.f32.mrf.mxu3 }
 0x14a   :  { %v580_v11 = vmul.f32 %v554_v49, %v1037_v30 }
 0x14c   :  { %v763_v12 = vpack.c.bf16 %v580_v11, %v579_v52 }
 0x14d   :  { %v536_v20 = vpop.f32.mrf.mxu1 }
 0x14e   :  { %786 = vst [vmem:[%s1129_s6 + $0x28] sm:$0xff] %v763_v12   ;;  %v574_v34 = vmul.f32 %v536_v20, %v1062_v6 }
 0x150   :  { %v748_v14 = vpack.c.bf16 %v574_v34, %v573_v13 }
 0x151   :  { %v557_v15 = vpop.f32.mrf.mxu3 }
 0x152   :  { %783 = vst [vmem:[%s1129_s6 + $0x10] sm:$0xff] %v748_v14   ;;  %v581_v30 = vmul.f32 %v557_v15, %v1048_v45 }
 0x155   :  { %v539_v16 = vpop.f32.mrf.mxu1 }
 0x156   :  { %v575_v21 = vmul.f32 %v539_v16, %v1076_v23 }
 0x159   :  { %v560_v1 = vpop.f32.mrf.mxu3 }
 0x15a   :  { %v582_v18 = vmul.f32 %v560_v1, %v1059_v0 }
 0x15c   :  { %v768_v19 = vpack.c.bf16 %v582_v18, %v581_v30 }
 0x15d   :  { %v542_v51 = vpop.f32.mrf.mxu1 }
 0x15e   :  { %787 = vst [vmem:[%s1129_s6 + $0x30] sm:$0xff] %v768_v19   ;;  %v576_v6 = vmul.f32 %v542_v51, %v394_v38 }
 0x160   :  { %v753_v22 = vpack.c.bf16 %v576_v6, %v575_v21 }
 0x161   :  { %v563_v24 = vpop.f32.mrf.mxu3 }
 0x162   :  { %784 = vst [vmem:[%s1129_s6 + $0x18] sm:$0xff] %v753_v22   ;;  %v583_v45 = vmul.f32 %v563_v24, %v1070_v17 }
 0x169   :  { %v566_v25 = vpop.f32.mrf.mxu3 }
 0x16a   :  { %v584_v26 = vmul.f32 %v566_v25, %v434_v48 }
 0x16c   :  { %v773_v0 = vpack.c.bf16 %v584_v26, %v583_v45 }
 0x16e   :  { %788 = vst [vmem:[%s1129_s6 + $0x38] sm:$0xff] %v773_v0  }

// kernel: multi_head_gcn_gvae_forward.5
= control target key start
LH: loop header
LB: loop body
LE: loop exit
PB: predicated region body
PF: predicated region fallthrough
CT: control target
= control target key end

     0   :  { %vm43_vm0 = vcmask 130048   ;;  %s1103_s1 = inlined_call_operand.vmem [shape: f32[128,16], index: 1, kind: input, shape index: {}, may-alias: {0,1}]   ;;  %s1104_s0 = inlined_call_operand.vmem [shape: f32[128,16], index: 0, kind: input, shape index: {}, may-alias: {0,1}]   ;;  %s1105_s2 = inlined_call_operand.vmem [shape: f32[128,128], index: 2, kind: output, shape index: {}]  }
   0x1   :  { %v42_v0 = vld [vmem:[%s1103_s1 + $0x78] sm:$0xff]  ;;  %v41_v1 = vld [vmem:[%s1103_s1 + $0x70] sm:$0xff]  ;;  %v40_v2 = vld [vmem:[%s1103_s1 + $0x68] sm:$0xff] }
   0x2   :  { %529 = vmatpush.xpose.msk.msra.mxu0 %vm43_vm0, %v42_v0  ;;  %577 = vmatpush.xpose.msk.msra.mxu1 %vm43_vm0, %v42_v0  ;;  %v39_v3 = vld [vmem:[%s1103_s1 + $0x60] sm:$0xff]  ;;  %v38_v4 = vld [vmem:[%s1103_s1 + $0x58] sm:$0xff]  ;;  %v37_v5 = vld [vmem:[%s1103_s1 + $0x50] sm:$0xff] }
   0x3   :  { %578 = vmatpush.xpose.msk.msra.mxu2 %vm43_vm0, %v42_v0  ;;  %579 = vmatpush.xpose.msk.msra.mxu3 %vm43_vm0, %v42_v0  ;;  %v36_v6 = vld [vmem:[%s1103_s1 + $0x48] sm:$0xff]  ;;  %v35_v7 = vld [vmem:[%s1103_s1 + $0x40] sm:$0xff]  ;;  %v34_v8 = vld [vmem:[%s1103_s1 + $0x38] sm:$0xff] }
   0x4   :  { %v33_v9 = vld [vmem:[%s1103_s1 + $0x30] sm:$0xff]  ;;  %v32_v10 = vld [vmem:[%s1103_s1 + $0x28] sm:$0xff]  ;;  %v31_v11 = vld [vmem:[%s1103_s1 + $0x20] sm:$0xff] }
   0x5   :  { %v30_v12 = vld [vmem:[%s1103_s1 + $0x18] sm:$0xff]  ;;  %v29_v13 = vld [vmem:[%s1103_s1 + $0x10] sm:$0xff]  ;;  %v28_v14 = vld [vmem:[%s1103_s1 + $0x8] sm:$0xff] }
   0x6   :  { %530 = vmatpush.xpose.msk.msra.mxu0 %vm43_vm0, %v41_v1  ;;  %580 = vmatpush.xpose.msk.msra.mxu1 %vm43_vm0, %v41_v1  ;;  %v27_v15 = vld [vmem:[%s1103_s1] sm:$0xff]  ;;  %v12_v20 = vld [vmem:[%s1104_s0 + $0x8] sm:$0xff]  ;;  %v13_v24 = vld [vmem:[%s1104_s0 + $0x10] sm:$0xff] }
   0x7   :  { %581 = vmatpush.xpose.msk.msra.mxu2 %vm43_vm0, %v41_v1  ;;  %582 = vmatpush.xpose.msk.msra.mxu3 %vm43_vm0, %v41_v1  ;;  %v11_v16 = vld [vmem:[%s1104_s0] sm:$0xff]  ;;  %v16_v21 = vld [vmem:[%s1104_s0 + $0x28] sm:$0xff]  ;;  %v17_v25 = vld [vmem:[%s1104_s0 + $0x30] sm:$0xff] }
   0x8   :  { %v15_v17 = vld [vmem:[%s1104_s0 + $0x20] sm:$0xff]  ;;  %v20_v22 = vld [vmem:[%s1104_s0 + $0x48] sm:$0xff]  ;;  %v21_v26 = vld [vmem:[%s1104_s0 + $0x50] sm:$0xff] }
   0x9   :  { %v19_v18 = vld [vmem:[%s1104_s0 + $0x40] sm:$0xff]  ;;  %v24_v23 = vld [vmem:[%s1104_s0 + $0x68] sm:$0xff]  ;;  %v25_v27 = vld [vmem:[%s1104_s0 + $0x70] sm:$0xff] }
   0xa   :  { %531 = vmatpush.xpose.msk.msra.mxu0 %vm43_vm0, %v40_v2  ;;  %583 = vmatpush.xpose.msk.msra.mxu1 %vm43_vm0, %v40_v2  ;;  %v23_v19 = vld [vmem:[%s1104_s0 + $0x60] sm:$0xff]  ;;  %v14_v28 = vld [vmem:[%s1104_s0 + $0x18] sm:$0xff] }
   0xb   :  { %584 = vmatpush.xpose.msk.msra.mxu2 %vm43_vm0, %v40_v2  ;;  %585 = vmatpush.xpose.msk.msra.mxu3 %vm43_vm0, %v40_v2  ;;  %v18_v29 = vld [vmem:[%s1104_s0 + $0x38] sm:$0xff] }
   0xc   :  { %v22_v30 = vld [vmem:[%s1104_s0 + $0x58] sm:$0xff] }
   0xd   :  { %v26_v31 = vld [vmem:[%s1104_s0 + $0x78] sm:$0xff] }
   0xe   :  { %532 = vmatpush.xpose.msk.msra.mxu0 %vm43_vm0, %v39_v3  ;;  %586 = vmatpush.xpose.msk.msra.mxu1 %vm43_vm0, %v39_v3 }
   0xf   :  { %587 = vmatpush.xpose.msk.msra.mxu2 %vm43_vm0, %v39_v3  ;;  %588 = vmatpush.xpose.msk.msra.mxu3 %vm43_vm0, %v39_v3 }
  0x12   :  { %533 = vmatpush.xpose.msk.msra.mxu0 %vm43_vm0, %v38_v4  ;;  %589 = vmatpush.xpose.msk.msra.mxu1 %vm43_vm0, %v38_v4 }
  0x13   :  { %590 = vmatpush.xpose.msk.msra.mxu2 %vm43_vm0, %v38_v4  ;;  %591 = vmatpush.xpose.msk.msra.mxu3 %vm43_vm0, %v38_v4 }
  0x16   :  { %534 = vmatpush.xpose.msk.msra.mxu0 %vm43_vm0, %v37_v5  ;;  %592 = vmatpush.xpose.msk.msra.mxu1 %vm43_vm0, %v37_v5 }
  0x17   :  { %593 = vmatpush.xpose.msk.msra.mxu2 %vm43_vm0, %v37_v5  ;;  %594 = vmatpush.xpose.msk.msra.mxu3 %vm43_vm0, %v37_v5 }
  0x1a   :  { %535 = vmatpush.xpose.msk.msra.mxu0 %vm43_vm0, %v36_v6  ;;  %595 = vmatpush.xpose.msk.msra.mxu1 %vm43_vm0, %v36_v6 }
  0x1b   :  { %596 = vmatpush.xpose.msk.msra.mxu2 %vm43_vm0, %v36_v6  ;;  %597 = vmatpush.xpose.msk.msra.mxu3 %vm43_vm0, %v36_v6 }
  0x1e   :  { %536 = vmatpush.xpose.msk.msra.mxu0 %vm43_vm0, %v35_v7  ;;  %598 = vmatpush.xpose.msk.msra.mxu1 %vm43_vm0, %v35_v7 }
  0x1f   :  { %599 = vmatpush.xpose.msk.msra.mxu2 %vm43_vm0, %v35_v7  ;;  %600 = vmatpush.xpose.msk.msra.mxu3 %vm43_vm0, %v35_v7 }
  0x22   :  { %537 = vmatpush.xpose.msk.msra.mxu0 %vm43_vm0, %v34_v8  ;;  %601 = vmatpush.xpose.msk.msra.mxu1 %vm43_vm0, %v34_v8 }
  0x23   :  { %602 = vmatpush.xpose.msk.msra.mxu2 %vm43_vm0, %v34_v8  ;;  %603 = vmatpush.xpose.msk.msra.mxu3 %vm43_vm0, %v34_v8 }
  0x26   :  { %538 = vmatpush.xpose.msk.msra.mxu0 %vm43_vm0, %v33_v9  ;;  %604 = vmatpush.xpose.msk.msra.mxu1 %vm43_vm0, %v33_v9 }
  0x27   :  { %605 = vmatpush.xpose.msk.msra.mxu2 %vm43_vm0, %v33_v9  ;;  %606 = vmatpush.xpose.msk.msra.mxu3 %vm43_vm0, %v33_v9 }
  0x2a   :  { %539 = vmatpush.xpose.msk.msra.mxu0 %vm43_vm0, %v32_v10  ;;  %607 = vmatpush.xpose.msk.msra.mxu1 %vm43_vm0, %v32_v10 }
  0x2b   :  { %608 = vmatpush.xpose.msk.msra.mxu2 %vm43_vm0, %v32_v10  ;;  %609 = vmatpush.xpose.msk.msra.mxu3 %vm43_vm0, %v32_v10 }
  0x2e   :  { %540 = vmatpush.xpose.msk.msra.mxu0 %vm43_vm0, %v31_v11  ;;  %610 = vmatpush.xpose.msk.msra.mxu1 %vm43_vm0, %v31_v11 }
  0x2f   :  { %611 = vmatpush.xpose.msk.msra.mxu2 %vm43_vm0, %v31_v11  ;;  %612 = vmatpush.xpose.msk.msra.mxu3 %vm43_vm0, %v31_v11 }
  0x32   :  { %541 = vmatpush.xpose.msk.msra.mxu0 %vm43_vm0, %v30_v12  ;;  %613 = vmatpush.xpose.msk.msra.mxu1 %vm43_vm0, %v30_v12 }
  0x33   :  { %614 = vmatpush.xpose.msk.msra.mxu2 %vm43_vm0, %v30_v12  ;;  %615 = vmatpush.xpose.msk.msra.mxu3 %vm43_vm0, %v30_v12 }
  0x36   :  { %542 = vmatpush.xpose.msk.msra.mxu0 %vm43_vm0, %v29_v13  ;;  %616 = vmatpush.xpose.msk.msra.mxu1 %vm43_vm0, %v29_v13 }
  0x37   :  { %617 = vmatpush.xpose.msk.msra.mxu2 %vm43_vm0, %v29_v13  ;;  %618 = vmatpush.xpose.msk.msra.mxu3 %vm43_vm0, %v29_v13 }
  0x3a   :  { %543 = vmatpush.xpose.msk.msra.mxu0 %vm43_vm0, %v28_v14  ;;  %619 = vmatpush.xpose.msk.msra.mxu1 %vm43_vm0, %v28_v14 }
  0x3b   :  { %620 = vmatpush.xpose.msk.msra.mxu2 %vm43_vm0, %v28_v14  ;;  %621 = vmatpush.xpose.msk.msra.mxu3 %vm43_vm0, %v28_v14 }
  0x3e   :  { %544 = vmatpush.xpose.msk.msra.mxu0 %vm43_vm0, %v27_v15  ;;  %622 = vmatpush.xpose.msk.msra.mxu1 %vm43_vm0, %v27_v15 }
  0x3f   :  { %623 = vmatpush.xpose.msk.msra.mxu2 %vm43_vm0, %v27_v15  ;;  %624 = vmatpush.xpose.msk.msra.mxu3 %vm43_vm0, %v27_v15 }
  0x41   :  { %545 = vmatmul.msk.f32.vlgmr.msra.gmra.mxu0 %vm43_vm0, %v11_v16  ;;  %549 = vmatmul.msk.f32.vlgmr.msra.gmra.mxu1 %vm43_vm0, %v15_v17 }
  0x42   :  { %553 = vmatmul.msk.f32.vlgmr.msra.gmra.mxu2 %vm43_vm0, %v19_v18  ;;  %557 = vmatmul.msk.f32.vlgmr.msra.gmra.mxu3 %vm43_vm0, %v23_v19 }
  0x49   :  { %546 = vmatmul.msk.f32.gmra.mxu0 %vm43_vm0, %v12_v20  ;;  %550 = vmatmul.msk.f32.gmra.mxu1 %vm43_vm0, %v16_v21 }
  0x4a   :  { %554 = vmatmul.msk.f32.gmra.mxu2 %vm43_vm0, %v20_v22  ;;  %558 = vmatmul.msk.f32.gmra.mxu3 %vm43_vm0, %v24_v23 }
  0x51   :  { %547 = vmatmul.msk.f32.gmra.mxu0 %vm43_vm0, %v13_v24  ;;  %551 = vmatmul.msk.f32.gmra.mxu1 %vm43_vm0, %v17_v25 }
  0x52   :  { %555 = vmatmul.msk.f32.gmra.mxu2 %vm43_vm0, %v21_v26  ;;  %559 = vmatmul.msk.f32.gmra.mxu3 %vm43_vm0, %v25_v27 }
  0x59   :  { %548 = vmatmul.msk.f32.gmra.mxu0 %vm43_vm0, %v14_v28  ;;  %552 = vmatmul.msk.f32.gmra.mxu1 %vm43_vm0, %v18_v29 }
  0x5a   :  { %556 = vmatmul.msk.f32.gmra.mxu2 %vm43_vm0, %v22_v30  ;;  %560 = vmatmul.msk.f32.gmra.mxu3 %vm43_vm0, %v26_v31 }
  0xbe   :  { %v157_v32 = vpop.f32.mrf.mxu0  ;;  %v169_v33 = vpop.f32.mrf.mxu1 }
  0xbf   :  { %v561_v34 = vmul.f32 -1.442695, %v157_v32  ;;  %v565_v35 = vmul.f32 -1.442695, %v169_v33 }
  0xc1   :  { %625 = vpow2.f32 %v561_v34 }
  0xc2   :  { %627 = vpow2.f32 %v565_v35 }
  0xc5   :  { %v181_v36 = vpop.f32.mrf.mxu2  ;;  %v193_v37 = vpop.f32.mrf.mxu3 }
  0xc6   :  { %v569_v38 = vmul.f32 -1.442695, %v181_v36  ;;  %v573_v39 = vmul.f32 -1.442695, %v193_v37  ;;  %v160_v40 = vpop.f32.mrf.mxu0  ;;  %v172_v41 = vpop.f32.mrf.mxu1 }
  0xc7   :  { %v626_v42 = vpop.eup %625  ;;  %v562_v45 = vmul.f32 -1.442695, %v160_v40  ;;  %v566_v47 = vmul.f32 -1.442695, %v172_v41 }
  0xc8   :  { %v628_v43 = vpop.eup %627  ;;  %v253_v44 = vadd.f32 1.0, %v626_v42  ;;  %629 = vpow2.f32 %v569_v38 }
  0xc9   :  { %v257_v46 = vadd.f32 1.0, %v628_v43  ;;  %631 = vpow2.f32 %v573_v39 }
  0xca   :  { %633 = vrcp.f32 %v253_v44  ;;  %v278_v55 = vand.u32 2147483647, %v253_v44  ;;  %v280_v56 = vand.u32 2147483648, %v253_v44  ;;  %vm274_vm1 = vweird.f32 %v253_v44 }
  0xcb   :  { %635 = vrcp.f32 %v257_v46  ;;  %v338_v57 = vand.u32 2147483647, %v257_v46  ;;  %v340_v63 = vand.u32 2147483648, %v257_v46  ;;  %vm334_vm2 = vweird.f32 %v257_v46 }
  0xcc   :  { %637 = vpow2.f32 %v562_v45  ;;  %vm886_vm3 = vcmp.eq.f32.partialorder %v278_v55, 8.507059e+37  ;;  %v281_v4 = vor.u32 1.1754944e-38, %v280_v56 }
  0xcd   :  { %639 = vpow2.f32 %v566_v47  ;;  %v184_v48 = vpop.f32.mrf.mxu2  ;;  %v196_v53 = vpop.f32.mrf.mxu3  ;;  %vm890_vm4 = vcmp.eq.f32.partialorder %v338_v57, 8.507059e+37  ;;  %v341_v13 = vor.u32 1.1754944e-38, %v340_v63 }
  0xce   :  { %v630_v49 = vpop.eup %629  ;;  %v570_v50 = vmul.f32 -1.442695, %v184_v48  ;;  %v574_v0 = vmul.f32 -1.442695, %v196_v53  ;;  %v163_v7 = vpop.f32.mrf.mxu0 }
  0xcf   :  { %v632_v51 = vpop.eup %631  ;;  %v880_v52 = vadd.f32 1.0, %v630_v49  ;;  %v175_v11 = vpop.f32.mrf.mxu1  ;;  %v563_v17 = vmul.f32 -1.442695, %v163_v7 }
  0xd0   :  { %v634_v54 = vpop.eup %633  ;;  %v882_v58 = vadd.f32 1.0, %v632_v51  ;;  %v904_v21 = vmul.f32 -1.442695, %v175_v11 }
  0xd1   :  { %v636_v59 = vpop.eup %635  ;;  %v270_v60 = vmul.f32 %v634_v54, %v253_v44  ;;  %641 = vrcp.f32 %v880_v52  ;;  %vm275_vm5 = vweird.f32 %v634_v54  ;;  %v398_v16 = vand.u32 2147483647, %v880_v52 }
  0xd2   :  { %v638_v61 = vpop.eup %637  ;;  %v330_v62 = vmul.f32 %v636_v59, %v257_v46  ;;  %643 = vpow2.f32 %v570_v50  ;;  %vm335_vm6 = vweird.f32 %v636_v59  ;;  %vm276_vm7 = vmor %vm274_vm1, %vm275_vm5  ;;  %vm394_vm8 = vweird.f32 %v880_v52 }
  0xd3   :  { %v640_v1 = vpop.eup %639  ;;  %v271_v2 = vsub.f32 1.0, %v270_v60  ;;  %645 = vrcp.f32 %v882_v58  ;;  %v894_v9 = vadd.f32 1.0, %v638_v61  ;;  %vm336_vm9 = vmor %vm334_vm2, %vm335_vm6  ;;  %v400_v24 = vand.u32 2147483648, %v880_v52 }
  0xd4   :  { %v331_v5 = vsub.f32 1.0, %v330_v62  ;;  %v896_v10 = vadd.f32 1.0, %v640_v1  ;;  %647 = vpow2.f32 %v574_v0  ;;  %v458_v25 = vand.u32 2147483647, %v882_v58 }
  0xd5   :  { %v272_v8 = vmul.f32 %v634_v54, %v271_v2  ;;  %649 = vrcp.f32 %v894_v9  ;;  %vm919_vm10 = vcmp.eq.f32.partialorder %v398_v16, 8.507059e+37  ;;  %vm454_vm11 = vweird.f32 %v882_v58  ;;  %v187_v44 = vpop.f32.mrf.mxu2  ;;  %v199_v62 = vpop.f32.mrf.mxu3 }
  0xd6   :  { %v332_v12 = vmul.f32 %v636_v59, %v331_v5  ;;  %651 = vrcp.f32 %v896_v10  ;;  %v460_v32 = vand.u32 2147483648, %v882_v58  ;;  %v401_v38 = vor.u32 1.1754944e-38, %v400_v24  ;;  %v166_v5 = vpop.f32.mrf.mxu0 }
  0xd7   :  { %v642_v14 = vpop.eup %641  ;;  %v273_v15 = vadd.f32 %v634_v54, %v272_v8  ;;  %vm930_vm14 = vcmp.eq.f32.partialorder %v458_v25, 8.507059e+37  ;;  %653 = vpow2.f32 %v563_v17  ;;  %vm289_vm0 = vweird.f32 %v894_v9 }
  0xd8   :  { %v644_v18 = vpop.eup %643  ;;  %v333_v19 = vadd.f32 %v636_v59, %v332_v12  ;;  %v390_v20 = vmul.f32 %v642_v14, %v880_v52  ;;  %vm395_vm12 = vweird.f32 %v642_v14  ;;  %v461_v46 = vor.u32 1.1754944e-38, %v460_v32  ;;  %v178_v12 = vpop.f32.mrf.mxu1 }
  0xd9   :  { %v646_v22 = vpop.eup %645  ;;  %v277_v23 = vsel %vm276_vm7, %v634_v54, %v273_v15  ;;  %v928_v36 = vadd.f32 1.0, %v644_v18  ;;  %vm396_vm15 = vmor %vm394_vm8, %vm395_vm12  ;;  %v293_v47 = vand.u32 2147483647, %v894_v9  ;;  %v295_v52 = vand.u32 2147483648, %v894_v9 }
  0xda   :  { %v282_v26 = vsel %vm886_vm3, %v281_v4, %v277_v23  ;;  %v337_v27 = vsel %vm336_vm9, %v636_v59, %v333_v19  ;;  %v391_v28 = vsub.f32 1.0, %v390_v20  ;;  %v450_v29 = vmul.f32 %v646_v22, %v882_v58  ;;  %v648_v33 = vpop.eup %647 }
  0xdb   :  { %509 = vst [vmem:[%s1105_s2] sm:$0xff] %v282_v26  ;;  %v342_v30 = vsel %vm890_vm4, %v341_v13, %v337_v27  ;;  %v650_v37 = vpop.eup %649  ;;  %vm455_vm13 = vweird.f32 %v646_v22  ;;  %v935_v43 = vadd.f32 1.0, %v648_v33  ;;  %655 = vrcp.f32 %v928_v36 }
  0xdc   :  { %513 = vst [vmem:[%s1105_s2 + $0x20] sm:$0xff] %v342_v30  ;;  %v392_v34 = vmul.f32 %v642_v14, %v391_v28  ;;  %v451_v35 = vsub.f32 1.0, %v450_v29  ;;  %v285_v42 = vmul.f32 %v650_v37, %v894_v9  ;;  %v652_v45 = vpop.eup %651  ;;  %vm456_vm1 = vmor %vm454_vm11, %vm455_vm13  ;;  %vm290_vm2 = vweird.f32 %v650_v37 }
  0xdd   :  { %v345_v51 = vmul.f32 %v652_v45, %v896_v10  ;;  %v353_v54 = vand.u32 2147483647, %v896_v10  ;;  %657 = vrcp.f32 %v935_v43  ;;  %v654_v59 = vpop.eup %653  ;;  %vm349_vm3 = vweird.f32 %v896_v10  ;;  %vm291_vm5 = vmor %vm289_vm0, %vm290_vm2  ;;  %v190_v20 = vpop.f32.mrf.mxu2 }
  0xde   :  { %v393_v40 = vadd.f32 %v642_v14, %v392_v34  ;;  %v452_v41 = vmul.f32 %v646_v22, %v451_v35  ;;  %v286_v50 = vsub.f32 1.0, %v285_v42  ;;  %v355_v58 = vand.u32 2147483648, %v896_v10 }
  0xdf   :  { %v346_v57 = vsub.f32 1.0, %v345_v51  ;;  %v571_v61 = vmul.f32 -1.442695, %v187_v44  ;;  %vm350_vm4 = vweird.f32 %v652_v45  ;;  %v961_v1 = vadd.f32 1.0, %v654_v59  ;;  %v202_v44 = vpop.f32.mrf.mxu3 }
  0xe0   :  { %v397_v48 = vsel %vm396_vm15, %v642_v14, %v393_v40  ;;  %v453_v49 = vadd.f32 %v646_v22, %v452_v41  ;;  %v287_v56 = vmul.f32 %v650_v37, %v286_v50  ;;  %vm294_vm6 = vcmp.eq.f32.partialorder %v293_v47, 8.507059e+37  ;;  %vm351_vm8 = vmor %vm349_vm3, %vm350_vm4 }
  0xe1   :  { %v402_v53 = vsel %vm919_vm10, %v401_v38, %v397_v48  ;;  %v347_v0 = vmul.f32 %v652_v45, %v346_v57  ;;  %v656_v2 = vpop.eup %655  ;;  %v296_v3 = vor.u32 1.1754944e-38, %v295_v52  ;;  %vm966_vm7 = vcmp.eq.f32.partialorder %v353_v54, 8.507059e+37 }
  0xe2   :  { %517 = vst [vmem:[%s1105_s2 + $0x40] sm:$0xff] %v402_v53  ;;  %v457_v55 = vsel %vm456_vm1, %v646_v22, %v453_v49  ;;  %v288_v63 = vadd.f32 %v650_v37, %v287_v56  ;;  %659 = vpow2.f32 %v904_v21  ;;  %v405_v8 = vmul.f32 %v656_v2, %v928_v36 }
  0xe3   :  { %v462_v60 = vsel %vm930_vm14, %v461_v46, %v457_v55  ;;  %v348_v7 = vadd.f32 %v652_v45, %v347_v0  ;;  %v575_v11 = vmul.f32 -1.442695, %v199_v62  ;;  %v356_v9 = vor.u32 1.1754944e-38, %v355_v58  ;;  %v658_v15 = vpop.eup %657 }
  0xe4   :  { %521 = vst [vmem:[%s1105_s2 + $0x60] sm:$0xff] %v462_v60  ;;  %v292_v6 = vsel %vm291_vm5, %v650_v37, %v288_v63  ;;  %v413_v14 = vand.u32 2147483647, %v928_v36  ;;  %661 = vrcp.f32 %v961_v1  ;;  %v406_v17 = vsub.f32 1.0, %v405_v8 }
  0xe5   :  { %v297_v13 = vsel %vm294_vm6, %v296_v3, %v292_v6  ;;  %v352_v16 = vsel %vm351_vm8, %v652_v45, %v348_v7  ;;  %v415_v18 = vand.u32 2147483648, %v928_v36  ;;  %v564_v19 = vmul.f32 -1.442695, %v166_v5 }
  0xe6   :  { %510 = vst [vmem:[%s1105_s2 + $0x8] sm:$0xff] %v297_v13  ;;  %v357_v10 = vsel %vm966_vm7, %v356_v9, %v352_v16  ;;  %v465_v21 = vmul.f32 %v658_v15, %v935_v43  ;;  %663 = vpow2.f32 %v571_v61  ;;  %v568_v22 = vmul.f32 -1.442695, %v178_v12 }
  0xe7   :  { %514 = vst [vmem:[%s1105_s2 + $0x28] sm:$0xff] %v357_v10  ;;  %v407_v23 = vmul.f32 %v656_v2, %v406_v17  ;;  %vm409_vm9 = vweird.f32 %v928_v36  ;;  %vm410_vm10 = vweird.f32 %v656_v2  ;;  %665 = vpow2.f32 %v575_v11 }
  0xe8   :  { %v660_v24 = vpop.eup %659  ;;  %vm988_vm11 = vcmp.eq.f32.partialorder %v413_v14, 8.507059e+37  ;;  %v466_v26 = vsub.f32 1.0, %v465_v21  ;;  %v473_v27 = vand.u32 2147483647, %v935_v43  ;;  %v572_v28 = vmul.f32 -1.442695, %v190_v20  ;;  %vm411_vm12 = vmor %vm409_vm9, %vm410_vm10 }
  0xe9   :  { %v408_v29 = vadd.f32 %v656_v2, %v407_v23  ;;  %v475_v30 = vand.u32 2147483648, %v935_v43  ;;  %v994_v31 = vadd.f32 1.0, %v660_v24  ;;  %667 = vpow2.f32 %v564_v19 }
  0xea   :  { %v662_v32 = vpop.eup %661  ;;  %v416_v33 = vor.u32 1.1754944e-38, %v415_v18  ;;  %v467_v34 = vmul.f32 %v658_v15, %v466_v26  ;;  %vm470_vm13 = vweird.f32 %v658_v15  ;;  %669 = vpow2.f32 %v568_v22 }
  0xeb   :  { %v412_v35 = vsel %vm411_vm12, %v656_v2, %v408_v29  ;;  %vm469_vm14 = vweird.f32 %v935_v43  ;;  %v300_v36 = vmul.f32 %v662_v32, %v961_v1  ;;  %671 = vrcp.f32 %v994_v31 }
  0xec   :  { %v664_v37 = vpop.eup %663  ;;  %v417_v38 = vsel %vm988_vm11, %v416_v33, %v412_v35  ;;  %v468_v39 = vadd.f32 %v658_v15, %v467_v34  ;;  %vm474_vm15 = vcmp.eq.f32.partialorder %v473_v27, 8.507059e+37  ;;  %673 = vpow2.f32 %v572_v28  ;;  %vm471_vm0 = vmor %vm469_vm14, %vm470_vm13 }
  0xed   :  { %v666_v40 = vpop.eup %665  ;;  %518 = vst [vmem:[%s1105_s2 + $0x48] sm:$0xff] %v417_v38  ;;  %v476_v41 = vor.u32 1.1754944e-38, %v475_v30  ;;  %v301_v42 = vsub.f32 1.0, %v300_v36  ;;  %vm304_vm1 = vweird.f32 %v961_v1  ;;  %v1005_v43 = vadd.f32 1.0, %v664_v37 }
  0xee   :  { %v472_v45 = vsel %vm471_vm0, %v658_v15, %v468_v39  ;;  %v308_v46 = vand.u32 2147483647, %v961_v1  ;;  %v310_v47 = vand.u32 2147483648, %v961_v1  ;;  %v1009_v48 = vadd.f32 1.0, %v666_v40 }
  0xef   :  { %v668_v49 = vpop.eup %667  ;;  %v477_v50 = vsel %vm474_vm15, %v476_v41, %v472_v45  ;;  %v302_v51 = vmul.f32 %v662_v32, %v301_v42  ;;  %vm305_vm2 = vweird.f32 %v662_v32  ;;  %675 = vrcp.f32 %v1005_v43 }
  0xf0   :  { %v670_v53 = vpop.eup %669  ;;  %522 = vst [vmem:[%s1105_s2 + $0x68] sm:$0xff] %v477_v50  ;;  %677 = vrcp.f32 %v1009_v48  ;;  %v576_v52 = vmul.f32 -1.442695, %v202_v44  ;;  %vm306_vm3 = vmor %vm304_vm1, %vm305_vm2  ;;  %vm309_vm4 = vcmp.eq.f32.partialorder %v308_v46, 8.507059e+37  ;;  %v311_v57 = vor.u32 1.1754944e-38, %v310_v47 }
  0xf1   :  { %v672_v54 = vpop.eup %671  ;;  %v303_v55 = vadd.f32 %v662_v32, %v302_v51  ;;  %vm364_vm5 = vweird.f32 %v994_v31  ;;  %v368_v58 = vand.u32 2147483647, %v994_v31  ;;  %v370_v61 = vand.u32 2147483648, %v994_v31 }
  0xf2   :  { %v674_v56 = vpop.eup %673  ;;  %v360_v59 = vmul.f32 %v672_v54, %v994_v31  ;;  %v1022_v62 = vadd.f32 1.0, %v668_v49  ;;  %v1024_v2 = vadd.f32 1.0, %v670_v53  ;;  %679 = vpow2.f32 %v576_v52 }
  0xf3   :  { %v307_v60 = vsel %vm306_vm3, %v662_v32, %v303_v55  ;;  %v428_v3 = vand.u32 2147483647, %v1005_v43  ;;  %v430_v4 = vand.u32 2147483648, %v1005_v43  ;;  %v1032_v5 = vadd.f32 1.0, %v674_v56 }
  0xf4   :  { %v312_v63 = vsel %vm309_vm4, %v311_v57, %v307_v60  ;;  %v361_v0 = vsub.f32 1.0, %v360_v59  ;;  %681 = vrcp.f32 %v1022_v62  ;;  %vm365_vm6 = vweird.f32 %v672_v54 }
  0xf5   :  { %v676_v1 = vpop.eup %675  ;;  %511 = vst [vmem:[%s1105_s2 + $0x10] sm:$0xff] %v312_v63  ;;  %683 = vrcp.f32 %v1024_v2  ;;  %vm1036_vm7 = vcmp.eq.f32.partialorder %v368_v58, 8.507059e+37  ;;  %v371_v12 = vor.u32 1.1754944e-38, %v370_v61  ;;  %v488_v9 = vand.u32 2147483647, %v1009_v48  ;;  %vm366_vm9 = vmor %vm364_vm5, %vm365_vm6 }
  0xf6   :  { %v678_v6 = vpop.eup %677  ;;  %v362_v7 = vmul.f32 %v672_v54, %v361_v0  ;;  %v420_v8 = vmul.f32 %v676_v1, %v1005_v43  ;;  %vm424_vm8 = vweird.f32 %v1005_v43  ;;  %v490_v16 = vand.u32 2147483648, %v1009_v48 }
  0xf7   :  { %v480_v13 = vmul.f32 %v678_v6, %v1009_v48  ;;  %vm1046_vm10 = vcmp.eq.f32.partialorder %v428_v3, 8.507059e+37  ;;  %vm484_vm11 = vweird.f32 %v1009_v48  ;;  %685 = vrcp.f32 %v1032_v5 }
  0xf8   :  { %v363_v14 = vadd.f32 %v672_v54, %v362_v7  ;;  %v421_v15 = vsub.f32 1.0, %v420_v8  ;;  %v680_v19 = vpop.eup %679  ;;  %vm425_vm12 = vweird.f32 %v676_v1  ;;  %v431_v21 = vor.u32 1.1754944e-38, %v430_v4 }
  0xf9   :  { %v481_v18 = vsub.f32 1.0, %v480_v13  ;;  %vm485_vm13 = vweird.f32 %v678_v6  ;;  %vm1054_vm14 = vcmp.eq.f32.partialorder %v488_v9, 8.507059e+37  ;;  %v491_v28 = vor.u32 1.1754944e-38, %v490_v16  ;;  %vm426_vm0 = vmor %vm424_vm8, %vm425_vm12 }
  0xfa   :  { %v367_v20 = vsel %vm366_vm9, %v672_v54, %v363_v14  ;;  %v422_v10 = vmul.f32 %v676_v1, %v421_v15  ;;  %v682_v22 = vpop.eup %681  ;;  %vm319_vm15 = vweird.f32 %v1022_v62  ;;  %v323_v31 = vand.u32 2147483647, %v1022_v62  ;;  %vm486_vm1 = vmor %vm484_vm11, %vm485_vm13 }
  0xfb   :  { %v372_v23 = vsel %vm1036_vm7, %v371_v12, %v367_v20  ;;  %v482_v24 = vmul.f32 %v678_v6, %v481_v18  ;;  %v684_v26 = vpop.eup %683  ;;  %v315_v29 = vmul.f32 %v682_v22, %v1022_v62  ;;  %v325_v32 = vand.u32 2147483648, %v1022_v62 }
  0xfc   :  { %515 = vst [vmem:[%s1105_s2 + $0x30] sm:$0xff] %v372_v23  ;;  %v423_v27 = vadd.f32 %v676_v1, %v422_v10  ;;  %v375_v33 = vmul.f32 %v684_v26, %v1024_v2  ;;  %vm379_vm2 = vweird.f32 %v1024_v2  ;;  %v268_v36 = vadd.f32 1.0, %v680_v19 }
  0xfd   :  { %v483_v30 = vadd.f32 %v678_v6, %v482_v24  ;;  %v316_v35 = vsub.f32 1.0, %v315_v29  ;;  %v686_v37 = vpop.eup %685  ;;  %v385_v41 = vand.u32 2147483648, %v1024_v2  ;;  %vm320_vm3 = vweird.f32 %v682_v22 }
  0xfe   :  { %v427_v34 = vsel %vm426_vm0, %v676_v1, %v423_v27  ;;  %v376_v40 = vsub.f32 1.0, %v375_v33  ;;  %v435_v44 = vmul.f32 %v686_v37, %v1032_v5  ;;  %vm380_vm4 = vweird.f32 %v684_v26  ;;  %vm321_vm6 = vmor %vm319_vm15, %vm320_vm3 }
  0xff   :  { %v432_v38 = vsel %vm1046_vm10, %v431_v21, %v427_v34  ;;  %v487_v39 = vsel %vm486_vm1, %v678_v6, %v483_v30  ;;  %v317_v43 = vmul.f32 %v682_v22, %v316_v35  ;;  %v383_v46 = vand.u32 2147483647, %v1024_v2  ;;  %vm381_vm7 = vmor %vm379_vm2, %vm380_vm4 }
 0x100   :  { %519 = vst [vmem:[%s1105_s2 + $0x50] sm:$0xff] %v432_v38  ;;  %v492_v42 = vsel %vm1054_vm14, %v491_v28, %v487_v39  ;;  %v377_v45 = vmul.f32 %v684_v26, %v376_v40  ;;  %687 = vrcp.f32 %v268_v36  ;;  %vm324_vm5 = vcmp.eq.f32.partialorder %v323_v31, 8.507059e+37 }
 0x101   :  { %523 = vst [vmem:[%s1105_s2 + $0x70] sm:$0xff] %v492_v42  ;;  %v318_v47 = vadd.f32 %v682_v22, %v317_v43  ;;  %v436_v48 = vsub.f32 1.0, %v435_v44  ;;  %v326_v49 = vor.u32 1.1754944e-38, %v325_v32  ;;  %v443_v51 = vand.u32 2147483647, %v1032_v5 }
 0x102   :  { %v378_v50 = vadd.f32 %v684_v26, %v377_v45  ;;  %v445_v53 = vand.u32 2147483648, %v1032_v5  ;;  %v386_v54 = vor.u32 1.1754944e-38, %v385_v41  ;;  %vm440_vm8 = vweird.f32 %v686_v37 }
 0x103   :  { %v322_v52 = vsel %vm321_vm6, %v682_v22, %v318_v47  ;;  %v437_v55 = vmul.f32 %v686_v37, %v436_v48  ;;  %vm384_vm9 = vcmp.eq.f32.partialorder %v383_v46, 8.507059e+37  ;;  %vm439_vm10 = vweird.f32 %v1032_v5 }
 0x104   :  { %v327_v56 = vsel %vm324_vm5, %v326_v49, %v322_v52  ;;  %v382_v57 = vsel %vm381_vm7, %v684_v26, %v378_v50  ;;  %vm441_vm11 = vmor %vm439_vm10, %vm440_vm8  ;;  %v446_v61 = vor.u32 1.1754944e-38, %v445_v53  ;;  %vm444_vm12 = vcmp.eq.f32.partialorder %v443_v51, 8.507059e+37 }
 0x105   :  { %512 = vst [vmem:[%s1105_s2 + $0x18] sm:$0xff] %v327_v56  ;;  %v387_v59 = vsel %vm384_vm9, %v386_v54, %v382_v57  ;;  %v438_v60 = vadd.f32 %v686_v37, %v437_v55  ;;  %v505_v1 = vand.u32 2147483648, %v268_v36  ;;  %v503_v4 = vand.u32 2147483647, %v268_v36 }
 0x106   :  { %v688_v58 = vpop.eup %687  ;;  %516 = vst [vmem:[%s1105_s2 + $0x38] sm:$0xff] %v387_v59  ;;  %vm499_vm14 = vweird.f32 %v268_v36 }
 0x107   :  { %v442_v62 = vsel %vm441_vm11, %v686_v37, %v438_v60  ;;  %v495_v63 = vmul.f32 %v688_v58, %v268_v36  ;;  %vm500_vm13 = vweird.f32 %v688_v58  ;;  %v506_v6 = vor.u32 1.1754944e-38, %v505_v1 }
 0x108   :  { %v447_v0 = vsel %vm444_vm12, %v446_v61, %v442_v62  ;;  %vm501_vm15 = vmor %vm499_vm14, %vm500_vm13  ;;  %vm504_vm0 = vcmp.eq.f32.partialorder %v503_v4, 8.507059e+37 }
 0x109   :  { %520 = vst [vmem:[%s1105_s2 + $0x58] sm:$0xff] %v447_v0  ;;  %v496_v2 = vsub.f32 1.0, %v495_v63 }
 0x10b   :  { %v497_v3 = vmul.f32 %v688_v58, %v496_v2 }
 0x10d   :  { %v498_v5 = vadd.f32 %v688_v58, %v497_v3 }
 0x10f   :  { %v502_v7 = vsel %vm501_vm15, %v688_v58, %v498_v5 }
 0x110   :  { %v507_v8 = vsel %vm504_vm0, %v506_v6, %v502_v7 }
 0x111   :  { %524 = vst [vmem:[%s1105_s2 + $0x78] sm:$0xff] %v507_v8 }

</bundles_post_ra>
